<compile_context>
chip_gen: v5e
topology: v5e:2x2
jax: 0.10.0
libtpu: 0.0.40
codegen_flags: <defaults>
</compile_context>

<pallas_src>
import functools

import jax
import jax.numpy as jnp
from jax.experimental import pallas as pl
from jax.experimental.pallas import tpu as pltpu

# ---------------- config (stands in for `config` / `vocab` of the PyTorch module) -------------
VOCAB_SIZE = 20
CHAR_DIM = 32          # config.char_dim
HIDDEN = 32            # config.hidden_size
NUM_GRU_LAYERS = 1     # config.num_gru_layers
NUM_CLASSES = 4
BATCH = 2
SEQ = 8


def _bigru_classify_kernel(T, B, D, H, C,
                           x_ref,      # (T*B, D)  time-major embedded chars, row = t*B + b
                           wi_ref,     # (D, 6H)   [wi_fwd | wi_bwd], gate order (r, z, n) each
                           bi_ref,     # (1, 6H)
                           whf_ref,    # (H, 3H)   forward hidden->gates
                           bhf_ref,    # (1, 3H)
                           whb_ref,    # (H, 3H)   backward hidden->gates
                           bhb_ref,    # (1, 3H)
                           wc_ref,     # (2H, C)   classify weight (fwd rows on top)
                           bc_ref,     # (1, C)
                           out_ref):   # (T*B, C)  time-major logits
    # ---- hoisted input->gate matmul for BOTH directions over the full sequence ----
    gi = jnp.dot(x_ref[...], wi_ref[...], preferred_element_type=jnp.float32) + bi_ref[...]
    gi_f = gi[:, 0:3 * H]          # (T*B, 3H)  forward-direction input gates
    gi_b = gi[:, 3 * H:6 * H]      # (T*B, 3H)  backward-direction input gates

    whf = whf_ref[...]
    bhf = bhf_ref[...]
    whb = whb_ref[...]
    bhb = bhb_ref[...]

    def gru_step(gi_t, h, wh, bh):
        # PyTorch nn.GRU cell; gi_t already contains x_t @ W_i + b_i for gates (r, z, n).
        gh = jnp.dot(h, wh, preferred_element_type=jnp.float32) + bh          # (B, 3H)
        r = jax.nn.sigmoid(gi_t[:, 0:H] + gh[:, 0:H])
        z = jax.nn.sigmoid(gi_t[:, H:2 * H] + gh[:, H:2 * H])
        n = jnp.tanh(gi_t[:, 2 * H:3 * H] + r * gh[:, 2 * H:3 * H])
        return (1.0 - z) * n + z * h

    h_f = jnp.zeros((B, H), jnp.float32)
    h_b = jnp.zeros((B, H), jnp.float32)
    hs_f = []
    hs_b = []

    # Fully unrolled recurrence (T is static); both directions share the loop body so their
    # independent MXU/EUP/VPU chains interleave.
    for i in range(T):
        t_b = T - 1 - i
        h_f = gru_step(gi_f[i * B:(i + 1) * B, :], h_f, whf, bhf)
        h_b = gru_step(gi_b[t_b * B:(t_b + 1) * B, :], h_b, whb, bhb)
        hs_f.append(h_f)
        hs_b.append(h_b)

    # Assemble the full hidden-state history once (time-major slabs, no per-step stores).
    hf_all = jnp.concatenate(hs_f, axis=0)            # (T*B, H), row = t*B + b
    hb_all = jnp.concatenate(hs_b[::-1], axis=0)      # (T*B, H), row = t*B + b

    # classify without concatenating along the lane dim: split the weight instead.
    wc = wc_ref[...]
    logits = (jnp.dot(hf_all, wc[0:H, :], preferred_element_type=jnp.float32)
              + jnp.dot(hb_all, wc[H:2 * H, :], preferred_element_type=jnp.float32)
              + bc_ref[...])
    out_ref[...] = logits.astype(out_ref.dtype)


def bigru_segmenter(x_ids, params):
    """Forward pass of WordSegmentationModel (y=None path): returns logits [B, T, C]."""
    B, T = x_ids.shape
    D, H, C = CHAR_DIM, HIDDEN, NUM_CLASSES

    # embedding lookup (plain JAX gather glue); padding_idx=0 row is zero in the table.
    # Build the time-major 2-D slab the kernel wants: row index = t*B + b.
    x_emb_tm = jnp.take(params["embedding"], x_ids.T, axis=0)      # (T, B, D) f32
    x2d = x_emb_tm.reshape(T * B, D)

    # Pack the two directions' input weights/biases along the gate axis (done once in JAX glue).
    wi = jnp.concatenate([params["wi_f"], params["wi_b"]], axis=1)  # (D, 6H)
    bi = jnp.concatenate([params["bi_f"], params["bi_b"]], axis=1)  # (1, 6H)

    kernel = functools.partial(_bigru_classify_kernel, T, B, D, H, C)
    vmem = lambda: pl.BlockSpec(memory_space=pltpu.MemorySpace.VMEM)

    logits2d = pl.pallas_call(
        kernel,
        out_shape=jax.ShapeDtypeStruct((T * B, C), jnp.float32),
        in_specs=[vmem() for _ in range(9)],
        out_specs=vmem(),
    )(
        x2d, wi, bi,
        params["wh_f"], params["bh_f"],
        params["wh_b"], params["bh_b"],
        params["wc"], params["bc"],
    )

    # back to batch_first layout (cheap XLA glue at these sizes)
    return logits2d.reshape(T, B, C).transpose(1, 0, 2)             # (B, T, C)


# ---------------- pure-JAX reference (same math, for a sanity check) ----------------
def _gru_dir_ref(x_emb, wi, wh, bi, bh, H, reverse):
    B, T, D = x_emb.shape
    hs = []
    h = jnp.zeros((B, H), dtype=jnp.float32)
    time_order = range(T - 1, -1, -1) if reverse else range(T)
    for t in time_order:
        x_t = x_emb[:, t, :]
        gi = x_t @ wi + bi
        gh = h @ wh + bh
        r = jax.nn.sigmoid(gi[:, 0:H] + gh[:, 0:H])
        z = jax.nn.sigmoid(gi[:, H:2 * H] + gh[:, H:2 * H])
        n = jnp.tanh(gi[:, 2 * H:3 * H] + r * gh[:, 2 * H:3 * H])
        h = (1.0 - z) * n + z * h
        hs.append(h)
    if reverse:
        hs = hs[::-1]
    return jnp.stack(hs, axis=1)   # (B, T, H)


def reference(x_ids, params):
    x_emb = jnp.take(params["embedding"], x_ids, axis=0)
    H = HIDDEN
    hf = _gru_dir_ref(x_emb, params["wi_f"], params["wh_f"], params["bi_f"], params["bh_f"], H, False)
    hb = _gru_dir_ref(x_emb, params["wi_b"], params["wh_b"], params["bi_b"], params["bh_b"], H, True)
    feats = jnp.concatenate([hf, hb], axis=-1)
    return feats @ params["wc"] + params["bc"]


# ---------------- deterministic parameter init ----------------
def make_params(key):
    D, H, C, V = CHAR_DIM, HIDDEN, NUM_CLASSES, VOCAB_SIZE
    ks = jax.random.split(key, 12)
    scale = 0.1

    emb = scale * jax.random.normal(ks[0], (V, D), jnp.float32)
    emb = emb.at[0].set(0.0)   # padding_idx=0

    def w(k, shape):
        return scale * jax.random.normal(k, shape, jnp.float32)

    params = {
        "embedding": emb,
        # GRU weights stored pre-transposed: input->gates (D, 3H), hidden->gates (H, 3H),
        # PyTorch gate order (r, z, n).
        "wi_f": w(ks[1], (D, 3 * H)),
        "wh_f": w(ks[2], (H, 3 * H)),
        "bi_f": w(ks[3], (1, 3 * H)),
        "bh_f": w(ks[4], (1, 3 * H)),
        "wi_b": w(ks[5], (D, 3 * H)),
        "wh_b": w(ks[6], (H, 3 * H)),
        "bi_b": w(ks[7], (1, 3 * H)),
        "bh_b": w(ks[8], (1, 3 * H)),
        # classify: Linear(2H -> C), stored as (2H, C) so y = feats @ wc + bc
        "wc": w(ks[9], (2 * H, C)),
        "bc": w(ks[10], (1, C)),
    }
    return params


if __name__ == "__main__":
    key = jax.random.PRNGKey(0)
    pkey, xkey = jax.random.split(key)
    params = make_params(pkey)

    # token ids, 0 acts as padding index
    x_ids = jax.random.randint(xkey, (BATCH, SEQ), minval=0, maxval=VOCAB_SIZE, dtype=jnp.int32)

    logits = jax.block_until_ready(bigru_segmenter(x_ids, params))
    assert logits.shape == (BATCH, SEQ, NUM_CLASSES)
    assert logits.dtype == jnp.float32

    ref = jax.block_until_ready(reference(x_ids, params))
    err = float(jnp.max(jnp.abs(logits - ref)))
    assert err < 2e-3, f"max abs error too large: {err}"

    print("KERNEL_OK")
</pallas_src>

<mosaic_0001>
module attributes {stable_mosaic.version = 11 : i64} {
  func.func @_bigru_classify_kernel(%arg0: memref<16x32xf32, #tpu.memory_space<vmem>>, %arg1: memref<32x192xf32, #tpu.memory_space<vmem>>, %arg2: memref<1x192xf32, #tpu.memory_space<vmem>>, %arg3: memref<32x96xf32, #tpu.memory_space<vmem>>, %arg4: memref<1x96xf32, #tpu.memory_space<vmem>>, %arg5: memref<32x96xf32, #tpu.memory_space<vmem>>, %arg6: memref<1x96xf32, #tpu.memory_space<vmem>>, %arg7: memref<64x4xf32, #tpu.memory_space<vmem>>, %arg8: memref<1x4xf32, #tpu.memory_space<vmem>>, %arg9: memref<16x4xf32, #tpu.memory_space<vmem>>) attributes {dimension_semantics = [], scalar_prefetch = 0 : i64, scratch_operands = 0 : i64, tpu.core_type = #tpu.core_type<tc>} {
    %c0 = arith.constant 0 : index
    %c0_0 = arith.constant 0 : index
    %0 = vector.load %arg0[%c0, %c0_0] : memref<16x32xf32, #tpu.memory_space<vmem>>, vector<16x32xf32>
    %c0_1 = arith.constant 0 : index
    %c0_2 = arith.constant 0 : index
    %1 = vector.load %arg1[%c0_1, %c0_2] : memref<32x192xf32, #tpu.memory_space<vmem>>, vector<32x192xf32>
    %cst = arith.constant dense<0.000000e+00> : vector<16x192xf32>
    %2 = tpu.matmul %0, %1, %cst {dimension_numbers = #tpu.dot_dimension_numbers<[1], [0], [0], [1], [0, 0, 1, 1], [], []>} : vector<16x32xf32>, vector<32x192xf32>, vector<16x192xf32> -> vector<16x192xf32>
    %c0_3 = arith.constant 0 : index
    %c0_4 = arith.constant 0 : index
    %3 = vector.load %arg2[%c0_3, %c0_4] : memref<1x192xf32, #tpu.memory_space<vmem>>, vector<1x192xf32>
    %4 = vector.broadcast %3 : vector<1x192xf32> to vector<16x192xf32>
    %5 = arith.addf %2, %4 : vector<16x192xf32>
    %6 = vector.extract_strided_slice %5 {offsets = [0, 0], sizes = [16, 96], strides = [1, 1]} : vector<16x192xf32> to vector<16x96xf32>
    %7 = vector.extract_strided_slice %5 {offsets = [0, 96], sizes = [16, 96], strides = [1, 1]} : vector<16x192xf32> to vector<16x96xf32>
    %c0_5 = arith.constant 0 : index
    %c0_6 = arith.constant 0 : index
    %8 = vector.load %arg3[%c0_5, %c0_6] : memref<32x96xf32, #tpu.memory_space<vmem>>, vector<32x96xf32>
    %c0_7 = arith.constant 0 : index
    %c0_8 = arith.constant 0 : index
    %9 = vector.load %arg4[%c0_7, %c0_8] : memref<1x96xf32, #tpu.memory_space<vmem>>, vector<1x96xf32>
    %c0_9 = arith.constant 0 : index
    %c0_10 = arith.constant 0 : index
    %10 = vector.load %arg5[%c0_9, %c0_10] : memref<32x96xf32, #tpu.memory_space<vmem>>, vector<32x96xf32>
    %c0_11 = arith.constant 0 : index
    %c0_12 = arith.constant 0 : index
    %11 = vector.load %arg6[%c0_11, %c0_12] : memref<1x96xf32, #tpu.memory_space<vmem>>, vector<1x96xf32>
    %cst_13 = arith.constant 0.000000e+00 : f32
    %12 = vector.broadcast %cst_13 : f32 to vector<2x32xf32>
    %cst_14 = arith.constant 0.000000e+00 : f32
    %13 = vector.broadcast %cst_14 : f32 to vector<2x32xf32>
    %14 = vector.extract_strided_slice %6 {offsets = [0, 0], sizes = [2, 96], strides = [1, 1]} : vector<16x96xf32> to vector<2x96xf32>
    %cst_15 = arith.constant dense<0.000000e+00> : vector<2x96xf32>
    %15 = tpu.matmul %12, %8, %cst_15 {dimension_numbers = #tpu.dot_dimension_numbers<[1], [0], [0], [1], [0, 0, 1, 1], [], []>} : vector<2x32xf32>, vector<32x96xf32>, vector<2x96xf32> -> vector<2x96xf32>
    %16 = vector.broadcast %9 : vector<1x96xf32> to vector<2x96xf32>
    %17 = arith.addf %15, %16 : vector<2x96xf32>
    %18 = vector.extract_strided_slice %14 {offsets = [0, 0], sizes = [2, 32], strides = [1, 1]} : vector<2x96xf32> to vector<2x32xf32>
    %19 = vector.extract_strided_slice %17 {offsets = [0, 0], sizes = [2, 32], strides = [1, 1]} : vector<2x96xf32> to vector<2x32xf32>
    %20 = arith.addf %18, %19 : vector<2x32xf32>
    %21 = arith.negf %20 : vector<2x32xf32>
    %22 = math.exp %21 : vector<2x32xf32>
    %cst_16 = arith.constant 1.000000e+00 : f32
    %23 = vector.broadcast %cst_16 : f32 to vector<2x32xf32>
    %24 = arith.addf %23, %22 : vector<2x32xf32>
    %25 = arith.divf %23, %24 : vector<2x32xf32>
    %26 = vector.extract_strided_slice %14 {offsets = [0, 32], sizes = [2, 32], strides = [1, 1]} : vector<2x96xf32> to vector<2x32xf32>
    %27 = vector.extract_strided_slice %17 {offsets = [0, 32], sizes = [2, 32], strides = [1, 1]} : vector<2x96xf32> to vector<2x32xf32>
    %28 = arith.addf %26, %27 : vector<2x32xf32>
    %29 = arith.negf %28 : vector<2x32xf32>
    %30 = math.exp %29 : vector<2x32xf32>
    %cst_17 = arith.constant 1.000000e+00 : f32
    %31 = vector.broadcast %cst_17 : f32 to vector<2x32xf32>
    %32 = arith.addf %31, %30 : vector<2x32xf32>
    %33 = arith.divf %31, %32 : vector<2x32xf32>
    %34 = vector.extract_strided_slice %14 {offsets = [0, 64], sizes = [2, 32], strides = [1, 1]} : vector<2x96xf32> to vector<2x32xf32>
    %35 = vector.extract_strided_slice %17 {offsets = [0, 64], sizes = [2, 32], strides = [1, 1]} : vector<2x96xf32> to vector<2x32xf32>
    %36 = arith.mulf %25, %35 : vector<2x32xf32>
    %37 = arith.addf %34, %36 : vector<2x32xf32>
    %38 = math.tanh %37 : vector<2x32xf32>
    %cst_18 = arith.constant 1.000000e+00 : f32
    %39 = vector.broadcast %cst_18 : f32 to vector<2x32xf32>
    %40 = arith.subf %39, %33 : vector<2x32xf32>
    %41 = arith.mulf %40, %38 : vector<2x32xf32>
    %42 = arith.mulf %33, %12 : vector<2x32xf32>
    %43 = arith.addf %41, %42 : vector<2x32xf32>
    %44 = vector.extract_strided_slice %7 {offsets = [14, 0], sizes = [2, 96], strides = [1, 1]} : vector<16x96xf32> to vector<2x96xf32>
    %cst_19 = arith.constant dense<0.000000e+00> : vector<2x96xf32>
    %45 = tpu.matmul %13, %10, %cst_19 {dimension_numbers = #tpu.dot_dimension_numbers<[1], [0], [0], [1], [0, 0, 1, 1], [], []>} : vector<2x32xf32>, vector<32x96xf32>, vector<2x96xf32> -> vector<2x96xf32>
    %46 = vector.broadcast %11 : vector<1x96xf32> to vector<2x96xf32>
    %47 = arith.addf %45, %46 : vector<2x96xf32>
    %48 = vector.extract_strided_slice %44 {offsets = [0, 0], sizes = [2, 32], strides = [1, 1]} : vector<2x96xf32> to vector<2x32xf32>
    %49 = vector.extract_strided_slice %47 {offsets = [0, 0], sizes = [2, 32], strides = [1, 1]} : vector<2x96xf32> to vector<2x32xf32>
    %50 = arith.addf %48, %49 : vector<2x32xf32>
    %51 = arith.negf %50 : vector<2x32xf32>
    %52 = math.exp %51 : vector<2x32xf32>
    %cst_20 = arith.constant 1.000000e+00 : f32
    %53 = vector.broadcast %cst_20 : f32 to vector<2x32xf32>
    %54 = arith.addf %53, %52 : vector<2x32xf32>
    %55 = arith.divf %53, %54 : vector<2x32xf32>
    %56 = vector.extract_strided_slice %44 {offsets = [0, 32], sizes = [2, 32], strides = [1, 1]} : vector<2x96xf32> to vector<2x32xf32>
    %57 = vector.extract_strided_slice %47 {offsets = [0, 32], sizes = [2, 32], strides = [1, 1]} : vector<2x96xf32> to vector<2x32xf32>
    %58 = arith.addf %56, %57 : vector<2x32xf32>
    %59 = arith.negf %58 : vector<2x32xf32>
    %60 = math.exp %59 : vector<2x32xf32>
    %cst_21 = arith.constant 1.000000e+00 : f32
    %61 = vector.broadcast %cst_21 : f32 to vector<2x32xf32>
    %62 = arith.addf %61, %60 : vector<2x32xf32>
    %63 = arith.divf %61, %62 : vector<2x32xf32>
    %64 = vector.extract_strided_slice %44 {offsets = [0, 64], sizes = [2, 32], strides = [1, 1]} : vector<2x96xf32> to vector<2x32xf32>
    %65 = vector.extract_strided_slice %47 {offsets = [0, 64], sizes = [2, 32], strides = [1, 1]} : vector<2x96xf32> to vector<2x32xf32>
    %66 = arith.mulf %55, %65 : vector<2x32xf32>
    %67 = arith.addf %64, %66 : vector<2x32xf32>
    %68 = math.tanh %67 : vector<2x32xf32>
    %cst_22 = arith.constant 1.000000e+00 : f32
    %69 = vector.broadcast %cst_22 : f32 to vector<2x32xf32>
    %70 = arith.subf %69, %63 : vector<2x32xf32>
    %71 = arith.mulf %70, %68 : vector<2x32xf32>
    %72 = arith.mulf %63, %13 : vector<2x32xf32>
    %73 = arith.addf %71, %72 : vector<2x32xf32>
    %74 = vector.extract_strided_slice %6 {offsets = [2, 0], sizes = [2, 96], strides = [1, 1]} : vector<16x96xf32> to vector<2x96xf32>
    %cst_23 = arith.constant dense<0.000000e+00> : vector<2x96xf32>
    %75 = tpu.matmul %43, %8, %cst_23 {dimension_numbers = #tpu.dot_dimension_numbers<[1], [0], [0], [1], [0, 0, 1, 1], [], []>} : vector<2x32xf32>, vector<32x96xf32>, vector<2x96xf32> -> vector<2x96xf32>
    %76 = vector.broadcast %9 : vector<1x96xf32> to vector<2x96xf32>
    %77 = arith.addf %75, %76 : vector<2x96xf32>
    %78 = vector.extract_strided_slice %74 {offsets = [0, 0], sizes = [2, 32], strides = [1, 1]} : vector<2x96xf32> to vector<2x32xf32>
    %79 = vector.extract_strided_slice %77 {offsets = [0, 0], sizes = [2, 32], strides = [1, 1]} : vector<2x96xf32> to vector<2x32xf32>
    %80 = arith.addf %78, %79 : vector<2x32xf32>
    %81 = arith.negf %80 : vector<2x32xf32>
    %82 = math.exp %81 : vector<2x32xf32>
    %cst_24 = arith.constant 1.000000e+00 : f32
    %83 = vector.broadcast %cst_24 : f32 to vector<2x32xf32>
    %84 = arith.addf %83, %82 : vector<2x32xf32>
    %85 = arith.divf %83, %84 : vector<2x32xf32>
    %86 = vector.extract_strided_slice %74 {offsets = [0, 32], sizes = [2, 32], strides = [1, 1]} : vector<2x96xf32> to vector<2x32xf32>
    %87 = vector.extract_strided_slice %77 {offsets = [0, 32], sizes = [2, 32], strides = [1, 1]} : vector<2x96xf32> to vector<2x32xf32>
    %88 = arith.addf %86, %87 : vector<2x32xf32>
    %89 = arith.negf %88 : vector<2x32xf32>
    %90 = math.exp %89 : vector<2x32xf32>
    %cst_25 = arith.constant 1.000000e+00 : f32
    %91 = vector.broadcast %cst_25 : f32 to vector<2x32xf32>
    %92 = arith.addf %91, %90 : vector<2x32xf32>
    %93 = arith.divf %91, %92 : vector<2x32xf32>
    %94 = vector.extract_strided_slice %74 {offsets = [0, 64], sizes = [2, 32], strides = [1, 1]} : vector<2x96xf32> to vector<2x32xf32>
    %95 = vector.extract_strided_slice %77 {offsets = [0, 64], sizes = [2, 32], strides = [1, 1]} : vector<2x96xf32> to vector<2x32xf32>
    %96 = arith.mulf %85, %95 : vector<2x32xf32>
    %97 = arith.addf %94, %96 : vector<2x32xf32>
    %98 = math.tanh %97 : vector<2x32xf32>
    %cst_26 = arith.constant 1.000000e+00 : f32
    %99 = vector.broadcast %cst_26 : f32 to vector<2x32xf32>
    %100 = arith.subf %99, %93 : vector<2x32xf32>
    %101 = arith.mulf %100, %98 : vector<2x32xf32>
    %102 = arith.mulf %93, %43 : vector<2x32xf32>
    %103 = arith.addf %101, %102 : vector<2x32xf32>
    %104 = vector.extract_strided_slice %7 {offsets = [12, 0], sizes = [2, 96], strides = [1, 1]} : vector<16x96xf32> to vector<2x96xf32>
    %cst_27 = arith.constant dense<0.000000e+00> : vector<2x96xf32>
    %105 = tpu.matmul %73, %10, %cst_27 {dimension_numbers = #tpu.dot_dimension_numbers<[1], [0], [0], [1], [0, 0, 1, 1], [], []>} : vector<2x32xf32>, vector<32x96xf32>, vector<2x96xf32> -> vector<2x96xf32>
    %106 = vector.broadcast %11 : vector<1x96xf32> to vector<2x96xf32>
    %107 = arith.addf %105, %106 : vector<2x96xf32>
    %108 = vector.extract_strided_slice %104 {offsets = [0, 0], sizes = [2, 32], strides = [1, 1]} : vector<2x96xf32> to vector<2x32xf32>
    %109 = vector.extract_strided_slice %107 {offsets = [0, 0], sizes = [2, 32], strides = [1, 1]} : vector<2x96xf32> to vector<2x32xf32>
    %110 = arith.addf %108, %109 : vector<2x32xf32>
    %111 = arith.negf %110 : vector<2x32xf32>
    %112 = math.exp %111 : vector<2x32xf32>
    %cst_28 = arith.constant 1.000000e+00 : f32
    %113 = vector.broadcast %cst_28 : f32 to vector<2x32xf32>
    %114 = arith.addf %113, %112 : vector<2x32xf32>
    %115 = arith.divf %113, %114 : vector<2x32xf32>
    %116 = vector.extract_strided_slice %104 {offsets = [0, 32], sizes = [2, 32], strides = [1, 1]} : vector<2x96xf32> to vector<2x32xf32>
    %117 = vector.extract_strided_slice %107 {offsets = [0, 32], sizes = [2, 32], strides = [1, 1]} : vector<2x96xf32> to vector<2x32xf32>
    %118 = arith.addf %116, %117 : vector<2x32xf32>
    %119 = arith.negf %118 : vector<2x32xf32>
    %120 = math.exp %119 : vector<2x32xf32>
    %cst_29 = arith.constant 1.000000e+00 : f32
    %121 = vector.broadcast %cst_29 : f32 to vector<2x32xf32>
    %122 = arith.addf %121, %120 : vector<2x32xf32>
    %123 = arith.divf %121, %122 : vector<2x32xf32>
    %124 = vector.extract_strided_slice %104 {offsets = [0, 64], sizes = [2, 32], strides = [1, 1]} : vector<2x96xf32> to vector<2x32xf32>
    %125 = vector.extract_strided_slice %107 {offsets = [0, 64], sizes = [2, 32], strides = [1, 1]} : vector<2x96xf32> to vector<2x32xf32>
    %126 = arith.mulf %115, %125 : vector<2x32xf32>
    %127 = arith.addf %124, %126 : vector<2x32xf32>
    %128 = math.tanh %127 : vector<2x32xf32>
    %cst_30 = arith.constant 1.000000e+00 : f32
    %129 = vector.broadcast %cst_30 : f32 to vector<2x32xf32>
    %130 = arith.subf %129, %123 : vector<2x32xf32>
    %131 = arith.mulf %130, %128 : vector<2x32xf32>
    %132 = arith.mulf %123, %73 : vector<2x32xf32>
    %133 = arith.addf %131, %132 : vector<2x32xf32>
    %134 = vector.extract_strided_slice %6 {offsets = [4, 0], sizes = [2, 96], strides = [1, 1]} : vector<16x96xf32> to vector<2x96xf32>
    %cst_31 = arith.constant dense<0.000000e+00> : vector<2x96xf32>
    %135 = tpu.matmul %103, %8, %cst_31 {dimension_numbers = #tpu.dot_dimension_numbers<[1], [0], [0], [1], [0, 0, 1, 1], [], []>} : vector<2x32xf32>, vector<32x96xf32>, vector<2x96xf32> -> vector<2x96xf32>
    %136 = vector.broadcast %9 : vector<1x96xf32> to vector<2x96xf32>
    %137 = arith.addf %135, %136 : vector<2x96xf32>
    %138 = vector.extract_strided_slice %134 {offsets = [0, 0], sizes = [2, 32], strides = [1, 1]} : vector<2x96xf32> to vector<2x32xf32>
    %139 = vector.extract_strided_slice %137 {offsets = [0, 0], sizes = [2, 32], strides = [1, 1]} : vector<2x96xf32> to vector<2x32xf32>
    %140 = arith.addf %138, %139 : vector<2x32xf32>
    %141 = arith.negf %140 : vector<2x32xf32>
    %142 = math.exp %141 : vector<2x32xf32>
    %cst_32 = arith.constant 1.000000e+00 : f32
    %143 = vector.broadcast %cst_32 : f32 to vector<2x32xf32>
    %144 = arith.addf %143, %142 : vector<2x32xf32>
    %145 = arith.divf %143, %144 : vector<2x32xf32>
    %146 = vector.extract_strided_slice %134 {offsets = [0, 32], sizes = [2, 32], strides = [1, 1]} : vector<2x96xf32> to vector<2x32xf32>
    %147 = vector.extract_strided_slice %137 {offsets = [0, 32], sizes = [2, 32], strides = [1, 1]} : vector<2x96xf32> to vector<2x32xf32>
    %148 = arith.addf %146, %147 : vector<2x32xf32>
    %149 = arith.negf %148 : vector<2x32xf32>
    %150 = math.exp %149 : vector<2x32xf32>
    %cst_33 = arith.constant 1.000000e+00 : f32
    %151 = vector.broadcast %cst_33 : f32 to vector<2x32xf32>
    %152 = arith.addf %151, %150 : vector<2x32xf32>
    %153 = arith.divf %151, %152 : vector<2x32xf32>
    %154 = vector.extract_strided_slice %134 {offsets = [0, 64], sizes = [2, 32], strides = [1, 1]} : vector<2x96xf32> to vector<2x32xf32>
    %155 = vector.extract_strided_slice %137 {offsets = [0, 64], sizes = [2, 32], strides = [1, 1]} : vector<2x96xf32> to vector<2x32xf32>
    %156 = arith.mulf %145, %155 : vector<2x32xf32>
    %157 = arith.addf %154, %156 : vector<2x32xf32>
    %158 = math.tanh %157 : vector<2x32xf32>
    %cst_34 = arith.constant 1.000000e+00 : f32
    %159 = vector.broadcast %cst_34 : f32 to vector<2x32xf32>
    %160 = arith.subf %159, %153 : vector<2x32xf32>
    %161 = arith.mulf %160, %158 : vector<2x32xf32>
    %162 = arith.mulf %153, %103 : vector<2x32xf32>
    %163 = arith.addf %161, %162 : vector<2x32xf32>
    %164 = vector.extract_strided_slice %7 {offsets = [10, 0], sizes = [2, 96], strides = [1, 1]} : vector<16x96xf32> to vector<2x96xf32>
    %cst_35 = arith.constant dense<0.000000e+00> : vector<2x96xf32>
    %165 = tpu.matmul %133, %10, %cst_35 {dimension_numbers = #tpu.dot_dimension_numbers<[1], [0], [0], [1], [0, 0, 1, 1], [], []>} : vector<2x32xf32>, vector<32x96xf32>, vector<2x96xf32> -> vector<2x96xf32>
    %166 = vector.broadcast %11 : vector<1x96xf32> to vector<2x96xf32>
    %167 = arith.addf %165, %166 : vector<2x96xf32>
    %168 = vector.extract_strided_slice %164 {offsets = [0, 0], sizes = [2, 32], strides = [1, 1]} : vector<2x96xf32> to vector<2x32xf32>
    %169 = vector.extract_strided_slice %167 {offsets = [0, 0], sizes = [2, 32], strides = [1, 1]} : vector<2x96xf32> to vector<2x32xf32>
    %170 = arith.addf %168, %169 : vector<2x32xf32>
    %171 = arith.negf %170 : vector<2x32xf32>
    %172 = math.exp %171 : vector<2x32xf32>
    %cst_36 = arith.constant 1.000000e+00 : f32
    %173 = vector.broadcast %cst_36 : f32 to vector<2x32xf32>
    %174 = arith.addf %173, %172 : vector<2x32xf32>
    %175 = arith.divf %173, %174 : vector<2x32xf32>
    %176 = vector.extract_strided_slice %164 {offsets = [0, 32], sizes = [2, 32], strides = [1, 1]} : vector<2x96xf32> to vector<2x32xf32>
    %177 = vector.extract_strided_slice %167 {offsets = [0, 32], sizes = [2, 32], strides = [1, 1]} : vector<2x96xf32> to vector<2x32xf32>
    %178 = arith.addf %176, %177 : vector<2x32xf32>
    %179 = arith.negf %178 : vector<2x32xf32>
    %180 = math.exp %179 : vector<2x32xf32>
    %cst_37 = arith.constant 1.000000e+00 : f32
    %181 = vector.broadcast %cst_37 : f32 to vector<2x32xf32>
    %182 = arith.addf %181, %180 : vector<2x32xf32>
    %183 = arith.divf %181, %182 : vector<2x32xf32>
    %184 = vector.extract_strided_slice %164 {offsets = [0, 64], sizes = [2, 32], strides = [1, 1]} : vector<2x96xf32> to vector<2x32xf32>
    %185 = vector.extract_strided_slice %167 {offsets = [0, 64], sizes = [2, 32], strides = [1, 1]} : vector<2x96xf32> to vector<2x32xf32>
    %186 = arith.mulf %175, %185 : vector<2x32xf32>
    %187 = arith.addf %184, %186 : vector<2x32xf32>
    %188 = math.tanh %187 : vector<2x32xf32>
    %cst_38 = arith.constant 1.000000e+00 : f32
    %189 = vector.broadcast %cst_38 : f32 to vector<2x32xf32>
    %190 = arith.subf %189, %183 : vector<2x32xf32>
    %191 = arith.mulf %190, %188 : vector<2x32xf32>
    %192 = arith.mulf %183, %133 : vector<2x32xf32>
    %193 = arith.addf %191, %192 : vector<2x32xf32>
    %194 = vector.extract_strided_slice %6 {offsets = [6, 0], sizes = [2, 96], strides = [1, 1]} : vector<16x96xf32> to vector<2x96xf32>
    %cst_39 = arith.constant dense<0.000000e+00> : vector<2x96xf32>
    %195 = tpu.matmul %163, %8, %cst_39 {dimension_numbers = #tpu.dot_dimension_numbers<[1], [0], [0], [1], [0, 0, 1, 1], [], []>} : vector<2x32xf32>, vector<32x96xf32>, vector<2x96xf32> -> vector<2x96xf32>
    %196 = vector.broadcast %9 : vector<1x96xf32> to vector<2x96xf32>
    %197 = arith.addf %195, %196 : vector<2x96xf32>
    %198 = vector.extract_strided_slice %194 {offsets = [0, 0], sizes = [2, 32], strides = [1, 1]} : vector<2x96xf32> to vector<2x32xf32>
    %199 = vector.extract_strided_slice %197 {offsets = [0, 0], sizes = [2, 32], strides = [1, 1]} : vector<2x96xf32> to vector<2x32xf32>
    %200 = arith.addf %198, %199 : vector<2x32xf32>
    %201 = arith.negf %200 : vector<2x32xf32>
    %202 = math.exp %201 : vector<2x32xf32>
    %cst_40 = arith.constant 1.000000e+00 : f32
    %203 = vector.broadcast %cst_40 : f32 to vector<2x32xf32>
    %204 = arith.addf %203, %202 : vector<2x32xf32>
    %205 = arith.divf %203, %204 : vector<2x32xf32>
    %206 = vector.extract_strided_slice %194 {offsets = [0, 32], sizes = [2, 32], strides = [1, 1]} : vector<2x96xf32> to vector<2x32xf32>
    %207 = vector.extract_strided_slice %197 {offsets = [0, 32], sizes = [2, 32], strides = [1, 1]} : vector<2x96xf32> to vector<2x32xf32>
    %208 = arith.addf %206, %207 : vector<2x32xf32>
    %209 = arith.negf %208 : vector<2x32xf32>
    %210 = math.exp %209 : vector<2x32xf32>
    %cst_41 = arith.constant 1.000000e+00 : f32
    %211 = vector.broadcast %cst_41 : f32 to vector<2x32xf32>
    %212 = arith.addf %211, %210 : vector<2x32xf32>
    %213 = arith.divf %211, %212 : vector<2x32xf32>
    %214 = vector.extract_strided_slice %194 {offsets = [0, 64], sizes = [2, 32], strides = [1, 1]} : vector<2x96xf32> to vector<2x32xf32>
    %215 = vector.extract_strided_slice %197 {offsets = [0, 64], sizes = [2, 32], strides = [1, 1]} : vector<2x96xf32> to vector<2x32xf32>
    %216 = arith.mulf %205, %215 : vector<2x32xf32>
    %217 = arith.addf %214, %216 : vector<2x32xf32>
    %218 = math.tanh %217 : vector<2x32xf32>
    %cst_42 = arith.constant 1.000000e+00 : f32
    %219 = vector.broadcast %cst_42 : f32 to vector<2x32xf32>
    %220 = arith.subf %219, %213 : vector<2x32xf32>
    %221 = arith.mulf %220, %218 : vector<2x32xf32>
    %222 = arith.mulf %213, %163 : vector<2x32xf32>
    %223 = arith.addf %221, %222 : vector<2x32xf32>
    %224 = vector.extract_strided_slice %7 {offsets = [8, 0], sizes = [2, 96], strides = [1, 1]} : vector<16x96xf32> to vector<2x96xf32>
    %cst_43 = arith.constant dense<0.000000e+00> : vector<2x96xf32>
    %225 = tpu.matmul %193, %10, %cst_43 {dimension_numbers = #tpu.dot_dimension_numbers<[1], [0], [0], [1], [0, 0, 1, 1], [], []>} : vector<2x32xf32>, vector<32x96xf32>, vector<2x96xf32> -> vector<2x96xf32>
    %226 = vector.broadcast %11 : vector<1x96xf32> to vector<2x96xf32>
    %227 = arith.addf %225, %226 : vector<2x96xf32>
    %228 = vector.extract_strided_slice %224 {offsets = [0, 0], sizes = [2, 32], strides = [1, 1]} : vector<2x96xf32> to vector<2x32xf32>
    %229 = vector.extract_strided_slice %227 {offsets = [0, 0], sizes = [2, 32], strides = [1, 1]} : vector<2x96xf32> to vector<2x32xf32>
    %230 = arith.addf %228, %229 : vector<2x32xf32>
    %231 = arith.negf %230 : vector<2x32xf32>
    %232 = math.exp %231 : vector<2x32xf32>
    %cst_44 = arith.constant 1.000000e+00 : f32
    %233 = vector.broadcast %cst_44 : f32 to vector<2x32xf32>
    %234 = arith.addf %233, %232 : vector<2x32xf32>
    %235 = arith.divf %233, %234 : vector<2x32xf32>
    %236 = vector.extract_strided_slice %224 {offsets = [0, 32], sizes = [2, 32], strides = [1, 1]} : vector<2x96xf32> to vector<2x32xf32>
    %237 = vector.extract_strided_slice %227 {offsets = [0, 32], sizes = [2, 32], strides = [1, 1]} : vector<2x96xf32> to vector<2x32xf32>
    %238 = arith.addf %236, %237 : vector<2x32xf32>
    %239 = arith.negf %238 : vector<2x32xf32>
    %240 = math.exp %239 : vector<2x32xf32>
    %cst_45 = arith.constant 1.000000e+00 : f32
    %241 = vector.broadcast %cst_45 : f32 to vector<2x32xf32>
    %242 = arith.addf %241, %240 : vector<2x32xf32>
    %243 = arith.divf %241, %242 : vector<2x32xf32>
    %244 = vector.extract_strided_slice %224 {offsets = [0, 64], sizes = [2, 32], strides = [1, 1]} : vector<2x96xf32> to vector<2x32xf32>
    %245 = vector.extract_strided_slice %227 {offsets = [0, 64], sizes = [2, 32], strides = [1, 1]} : vector<2x96xf32> to vector<2x32xf32>
    %246 = arith.mulf %235, %245 : vector<2x32xf32>
    %247 = arith.addf %244, %246 : vector<2x32xf32>
    %248 = math.tanh %247 : vector<2x32xf32>
    %cst_46 = arith.constant 1.000000e+00 : f32
    %249 = vector.broadcast %cst_46 : f32 to vector<2x32xf32>
    %250 = arith.subf %249, %243 : vector<2x32xf32>
    %251 = arith.mulf %250, %248 : vector<2x32xf32>
    %252 = arith.mulf %243, %193 : vector<2x32xf32>
    %253 = arith.addf %251, %252 : vector<2x32xf32>
    %254 = vector.extract_strided_slice %6 {offsets = [8, 0], sizes = [2, 96], strides = [1, 1]} : vector<16x96xf32> to vector<2x96xf32>
    %cst_47 = arith.constant dense<0.000000e+00> : vector<2x96xf32>
    %255 = tpu.matmul %223, %8, %cst_47 {dimension_numbers = #tpu.dot_dimension_numbers<[1], [0], [0], [1], [0, 0, 1, 1], [], []>} : vector<2x32xf32>, vector<32x96xf32>, vector<2x96xf32> -> vector<2x96xf32>
    %256 = vector.broadcast %9 : vector<1x96xf32> to vector<2x96xf32>
    %257 = arith.addf %255, %256 : vector<2x96xf32>
    %258 = vector.extract_strided_slice %254 {offsets = [0, 0], sizes = [2, 32], strides = [1, 1]} : vector<2x96xf32> to vector<2x32xf32>
    %259 = vector.extract_strided_slice %257 {offsets = [0, 0], sizes = [2, 32], strides = [1, 1]} : vector<2x96xf32> to vector<2x32xf32>
    %260 = arith.addf %258, %259 : vector<2x32xf32>
    %261 = arith.negf %260 : vector<2x32xf32>
    %262 = math.exp %261 : vector<2x32xf32>
    %cst_48 = arith.constant 1.000000e+00 : f32
    %263 = vector.broadcast %cst_48 : f32 to vector<2x32xf32>
    %264 = arith.addf %263, %262 : vector<2x32xf32>
    %265 = arith.divf %263, %264 : vector<2x32xf32>
    %266 = vector.extract_strided_slice %254 {offsets = [0, 32], sizes = [2, 32], strides = [1, 1]} : vector<2x96xf32> to vector<2x32xf32>
    %267 = vector.extract_strided_slice %257 {offsets = [0, 32], sizes = [2, 32], strides = [1, 1]} : vector<2x96xf32> to vector<2x32xf32>
    %268 = arith.addf %266, %267 : vector<2x32xf32>
    %269 = arith.negf %268 : vector<2x32xf32>
    %270 = math.exp %269 : vector<2x32xf32>
    %cst_49 = arith.constant 1.000000e+00 : f32
    %271 = vector.broadcast %cst_49 : f32 to vector<2x32xf32>
    %272 = arith.addf %271, %270 : vector<2x32xf32>
    %273 = arith.divf %271, %272 : vector<2x32xf32>
    %274 = vector.extract_strided_slice %254 {offsets = [0, 64], sizes = [2, 32], strides = [1, 1]} : vector<2x96xf32> to vector<2x32xf32>
    %275 = vector.extract_strided_slice %257 {offsets = [0, 64], sizes = [2, 32], strides = [1, 1]} : vector<2x96xf32> to vector<2x32xf32>
    %276 = arith.mulf %265, %275 : vector<2x32xf32>
    %277 = arith.addf %274, %276 : vector<2x32xf32>
    %278 = math.tanh %277 : vector<2x32xf32>
    %cst_50 = arith.constant 1.000000e+00 : f32
    %279 = vector.broadcast %cst_50 : f32 to vector<2x32xf32>
    %280 = arith.subf %279, %273 : vector<2x32xf32>
    %281 = arith.mulf %280, %278 : vector<2x32xf32>
    %282 = arith.mulf %273, %223 : vector<2x32xf32>
    %283 = arith.addf %281, %282 : vector<2x32xf32>
    %284 = vector.extract_strided_slice %7 {offsets = [6, 0], sizes = [2, 96], strides = [1, 1]} : vector<16x96xf32> to vector<2x96xf32>
    %cst_51 = arith.constant dense<0.000000e+00> : vector<2x96xf32>
    %285 = tpu.matmul %253, %10, %cst_51 {dimension_numbers = #tpu.dot_dimension_numbers<[1], [0], [0], [1], [0, 0, 1, 1], [], []>} : vector<2x32xf32>, vector<32x96xf32>, vector<2x96xf32> -> vector<2x96xf32>
    %286 = vector.broadcast %11 : vector<1x96xf32> to vector<2x96xf32>
    %287 = arith.addf %285, %286 : vector<2x96xf32>
    %288 = vector.extract_strided_slice %284 {offsets = [0, 0], sizes = [2, 32], strides = [1, 1]} : vector<2x96xf32> to vector<2x32xf32>
    %289 = vector.extract_strided_slice %287 {offsets = [0, 0], sizes = [2, 32], strides = [1, 1]} : vector<2x96xf32> to vector<2x32xf32>
    %290 = arith.addf %288, %289 : vector<2x32xf32>
    %291 = arith.negf %290 : vector<2x32xf32>
    %292 = math.exp %291 : vector<2x32xf32>
    %cst_52 = arith.constant 1.000000e+00 : f32
    %293 = vector.broadcast %cst_52 : f32 to vector<2x32xf32>
    %294 = arith.addf %293, %292 : vector<2x32xf32>
    %295 = arith.divf %293, %294 : vector<2x32xf32>
    %296 = vector.extract_strided_slice %284 {offsets = [0, 32], sizes = [2, 32], strides = [1, 1]} : vector<2x96xf32> to vector<2x32xf32>
    %297 = vector.extract_strided_slice %287 {offsets = [0, 32], sizes = [2, 32], strides = [1, 1]} : vector<2x96xf32> to vector<2x32xf32>
    %298 = arith.addf %296, %297 : vector<2x32xf32>
    %299 = arith.negf %298 : vector<2x32xf32>
    %300 = math.exp %299 : vector<2x32xf32>
    %cst_53 = arith.constant 1.000000e+00 : f32
    %301 = vector.broadcast %cst_53 : f32 to vector<2x32xf32>
    %302 = arith.addf %301, %300 : vector<2x32xf32>
    %303 = arith.divf %301, %302 : vector<2x32xf32>
    %304 = vector.extract_strided_slice %284 {offsets = [0, 64], sizes = [2, 32], strides = [1, 1]} : vector<2x96xf32> to vector<2x32xf32>
    %305 = vector.extract_strided_slice %287 {offsets = [0, 64], sizes = [2, 32], strides = [1, 1]} : vector<2x96xf32> to vector<2x32xf32>
    %306 = arith.mulf %295, %305 : vector<2x32xf32>
    %307 = arith.addf %304, %306 : vector<2x32xf32>
    %308 = math.tanh %307 : vector<2x32xf32>
    %cst_54 = arith.constant 1.000000e+00 : f32
    %309 = vector.broadcast %cst_54 : f32 to vector<2x32xf32>
    %310 = arith.subf %309, %303 : vector<2x32xf32>
    %311 = arith.mulf %310, %308 : vector<2x32xf32>
    %312 = arith.mulf %303, %253 : vector<2x32xf32>
    %313 = arith.addf %311, %312 : vector<2x32xf32>
    %314 = vector.extract_strided_slice %6 {offsets = [10, 0], sizes = [2, 96], strides = [1, 1]} : vector<16x96xf32> to vector<2x96xf32>
    %cst_55 = arith.constant dense<0.000000e+00> : vector<2x96xf32>
    %315 = tpu.matmul %283, %8, %cst_55 {dimension_numbers = #tpu.dot_dimension_numbers<[1], [0], [0], [1], [0, 0, 1, 1], [], []>} : vector<2x32xf32>, vector<32x96xf32>, vector<2x96xf32> -> vector<2x96xf32>
    %316 = vector.broadcast %9 : vector<1x96xf32> to vector<2x96xf32>
    %317 = arith.addf %315, %316 : vector<2x96xf32>
    %318 = vector.extract_strided_slice %314 {offsets = [0, 0], sizes = [2, 32], strides = [1, 1]} : vector<2x96xf32> to vector<2x32xf32>
    %319 = vector.extract_strided_slice %317 {offsets = [0, 0], sizes = [2, 32], strides = [1, 1]} : vector<2x96xf32> to vector<2x32xf32>
    %320 = arith.addf %318, %319 : vector<2x32xf32>
    %321 = arith.negf %320 : vector<2x32xf32>
    %322 = math.exp %321 : vector<2x32xf32>
    %cst_56 = arith.constant 1.000000e+00 : f32
    %323 = vector.broadcast %cst_56 : f32 to vector<2x32xf32>
    %324 = arith.addf %323, %322 : vector<2x32xf32>
    %325 = arith.divf %323, %324 : vector<2x32xf32>
    %326 = vector.extract_strided_slice %314 {offsets = [0, 32], sizes = [2, 32], strides = [1, 1]} : vector<2x96xf32> to vector<2x32xf32>
    %327 = vector.extract_strided_slice %317 {offsets = [0, 32], sizes = [2, 32], strides = [1, 1]} : vector<2x96xf32> to vector<2x32xf32>
    %328 = arith.addf %326, %327 : vector<2x32xf32>
    %329 = arith.negf %328 : vector<2x32xf32>
    %330 = math.exp %329 : vector<2x32xf32>
    %cst_57 = arith.constant 1.000000e+00 : f32
    %331 = vector.broadcast %cst_57 : f32 to vector<2x32xf32>
    %332 = arith.addf %331, %330 : vector<2x32xf32>
    %333 = arith.divf %331, %332 : vector<2x32xf32>
    %334 = vector.extract_strided_slice %314 {offsets = [0, 64], sizes = [2, 32], strides = [1, 1]} : vector<2x96xf32> to vector<2x32xf32>
    %335 = vector.extract_strided_slice %317 {offsets = [0, 64], sizes = [2, 32], strides = [1, 1]} : vector<2x96xf32> to vector<2x32xf32>
    %336 = arith.mulf %325, %335 : vector<2x32xf32>
    %337 = arith.addf %334, %336 : vector<2x32xf32>
    %338 = math.tanh %337 : vector<2x32xf32>
    %cst_58 = arith.constant 1.000000e+00 : f32
    %339 = vector.broadcast %cst_58 : f32 to vector<2x32xf32>
    %340 = arith.subf %339, %333 : vector<2x32xf32>
    %341 = arith.mulf %340, %338 : vector<2x32xf32>
    %342 = arith.mulf %333, %283 : vector<2x32xf32>
    %343 = arith.addf %341, %342 : vector<2x32xf32>
    %344 = vector.extract_strided_slice %7 {offsets = [4, 0], sizes = [2, 96], strides = [1, 1]} : vector<16x96xf32> to vector<2x96xf32>
    %cst_59 = arith.constant dense<0.000000e+00> : vector<2x96xf32>
    %345 = tpu.matmul %313, %10, %cst_59 {dimension_numbers = #tpu.dot_dimension_numbers<[1], [0], [0], [1], [0, 0, 1, 1], [], []>} : vector<2x32xf32>, vector<32x96xf32>, vector<2x96xf32> -> vector<2x96xf32>
    %346 = vector.broadcast %11 : vector<1x96xf32> to vector<2x96xf32>
    %347 = arith.addf %345, %346 : vector<2x96xf32>
    %348 = vector.extract_strided_slice %344 {offsets = [0, 0], sizes = [2, 32], strides = [1, 1]} : vector<2x96xf32> to vector<2x32xf32>
    %349 = vector.extract_strided_slice %347 {offsets = [0, 0], sizes = [2, 32], strides = [1, 1]} : vector<2x96xf32> to vector<2x32xf32>
    %350 = arith.addf %348, %349 : vector<2x32xf32>
    %351 = arith.negf %350 : vector<2x32xf32>
    %352 = math.exp %351 : vector<2x32xf32>
    %cst_60 = arith.constant 1.000000e+00 : f32
    %353 = vector.broadcast %cst_60 : f32 to vector<2x32xf32>
    %354 = arith.addf %353, %352 : vector<2x32xf32>
    %355 = arith.divf %353, %354 : vector<2x32xf32>
    %356 = vector.extract_strided_slice %344 {offsets = [0, 32], sizes = [2, 32], strides = [1, 1]} : vector<2x96xf32> to vector<2x32xf32>
    %357 = vector.extract_strided_slice %347 {offsets = [0, 32], sizes = [2, 32], strides = [1, 1]} : vector<2x96xf32> to vector<2x32xf32>
    %358 = arith.addf %356, %357 : vector<2x32xf32>
    %359 = arith.negf %358 : vector<2x32xf32>
    %360 = math.exp %359 : vector<2x32xf32>
    %cst_61 = arith.constant 1.000000e+00 : f32
    %361 = vector.broadcast %cst_61 : f32 to vector<2x32xf32>
    %362 = arith.addf %361, %360 : vector<2x32xf32>
    %363 = arith.divf %361, %362 : vector<2x32xf32>
    %364 = vector.extract_strided_slice %344 {offsets = [0, 64], sizes = [2, 32], strides = [1, 1]} : vector<2x96xf32> to vector<2x32xf32>
    %365 = vector.extract_strided_slice %347 {offsets = [0, 64], sizes = [2, 32], strides = [1, 1]} : vector<2x96xf32> to vector<2x32xf32>
    %366 = arith.mulf %355, %365 : vector<2x32xf32>
    %367 = arith.addf %364, %366 : vector<2x32xf32>
    %368 = math.tanh %367 : vector<2x32xf32>
    %cst_62 = arith.constant 1.000000e+00 : f32
    %369 = vector.broadcast %cst_62 : f32 to vector<2x32xf32>
    %370 = arith.subf %369, %363 : vector<2x32xf32>
    %371 = arith.mulf %370, %368 : vector<2x32xf32>
    %372 = arith.mulf %363, %313 : vector<2x32xf32>
    %373 = arith.addf %371, %372 : vector<2x32xf32>
    %374 = vector.extract_strided_slice %6 {offsets = [12, 0], sizes = [2, 96], strides = [1, 1]} : vector<16x96xf32> to vector<2x96xf32>
    %cst_63 = arith.constant dense<0.000000e+00> : vector<2x96xf32>
    %375 = tpu.matmul %343, %8, %cst_63 {dimension_numbers = #tpu.dot_dimension_numbers<[1], [0], [0], [1], [0, 0, 1, 1], [], []>} : vector<2x32xf32>, vector<32x96xf32>, vector<2x96xf32> -> vector<2x96xf32>
    %376 = vector.broadcast %9 : vector<1x96xf32> to vector<2x96xf32>
    %377 = arith.addf %375, %376 : vector<2x96xf32>
    %378 = vector.extract_strided_slice %374 {offsets = [0, 0], sizes = [2, 32], strides = [1, 1]} : vector<2x96xf32> to vector<2x32xf32>
    %379 = vector.extract_strided_slice %377 {offsets = [0, 0], sizes = [2, 32], strides = [1, 1]} : vector<2x96xf32> to vector<2x32xf32>
    %380 = arith.addf %378, %379 : vector<2x32xf32>
    %381 = arith.negf %380 : vector<2x32xf32>
    %382 = math.exp %381 : vector<2x32xf32>
    %cst_64 = arith.constant 1.000000e+00 : f32
    %383 = vector.broadcast %cst_64 : f32 to vector<2x32xf32>
    %384 = arith.addf %383, %382 : vector<2x32xf32>
    %385 = arith.divf %383, %384 : vector<2x32xf32>
    %386 = vector.extract_strided_slice %374 {offsets = [0, 32], sizes = [2, 32], strides = [1, 1]} : vector<2x96xf32> to vector<2x32xf32>
    %387 = vector.extract_strided_slice %377 {offsets = [0, 32], sizes = [2, 32], strides = [1, 1]} : vector<2x96xf32> to vector<2x32xf32>
    %388 = arith.addf %386, %387 : vector<2x32xf32>
    %389 = arith.negf %388 : vector<2x32xf32>
    %390 = math.exp %389 : vector<2x32xf32>
    %cst_65 = arith.constant 1.000000e+00 : f32
    %391 = vector.broadcast %cst_65 : f32 to vector<2x32xf32>
    %392 = arith.addf %391, %390 : vector<2x32xf32>
    %393 = arith.divf %391, %392 : vector<2x32xf32>
    %394 = vector.extract_strided_slice %374 {offsets = [0, 64], sizes = [2, 32], strides = [1, 1]} : vector<2x96xf32> to vector<2x32xf32>
    %395 = vector.extract_strided_slice %377 {offsets = [0, 64], sizes = [2, 32], strides = [1, 1]} : vector<2x96xf32> to vector<2x32xf32>
    %396 = arith.mulf %385, %395 : vector<2x32xf32>
    %397 = arith.addf %394, %396 : vector<2x32xf32>
    %398 = math.tanh %397 : vector<2x32xf32>
    %cst_66 = arith.constant 1.000000e+00 : f32
    %399 = vector.broadcast %cst_66 : f32 to vector<2x32xf32>
    %400 = arith.subf %399, %393 : vector<2x32xf32>
    %401 = arith.mulf %400, %398 : vector<2x32xf32>
    %402 = arith.mulf %393, %343 : vector<2x32xf32>
    %403 = arith.addf %401, %402 : vector<2x32xf32>
    %404 = vector.extract_strided_slice %7 {offsets = [2, 0], sizes = [2, 96], strides = [1, 1]} : vector<16x96xf32> to vector<2x96xf32>
    %cst_67 = arith.constant dense<0.000000e+00> : vector<2x96xf32>
    %405 = tpu.matmul %373, %10, %cst_67 {dimension_numbers = #tpu.dot_dimension_numbers<[1], [0], [0], [1], [0, 0, 1, 1], [], []>} : vector<2x32xf32>, vector<32x96xf32>, vector<2x96xf32> -> vector<2x96xf32>
    %406 = vector.broadcast %11 : vector<1x96xf32> to vector<2x96xf32>
    %407 = arith.addf %405, %406 : vector<2x96xf32>
    %408 = vector.extract_strided_slice %404 {offsets = [0, 0], sizes = [2, 32], strides = [1, 1]} : vector<2x96xf32> to vector<2x32xf32>
    %409 = vector.extract_strided_slice %407 {offsets = [0, 0], sizes = [2, 32], strides = [1, 1]} : vector<2x96xf32> to vector<2x32xf32>
    %410 = arith.addf %408, %409 : vector<2x32xf32>
    %411 = arith.negf %410 : vector<2x32xf32>
    %412 = math.exp %411 : vector<2x32xf32>
    %cst_68 = arith.constant 1.000000e+00 : f32
    %413 = vector.broadcast %cst_68 : f32 to vector<2x32xf32>
    %414 = arith.addf %413, %412 : vector<2x32xf32>
    %415 = arith.divf %413, %414 : vector<2x32xf32>
    %416 = vector.extract_strided_slice %404 {offsets = [0, 32], sizes = [2, 32], strides = [1, 1]} : vector<2x96xf32> to vector<2x32xf32>
    %417 = vector.extract_strided_slice %407 {offsets = [0, 32], sizes = [2, 32], strides = [1, 1]} : vector<2x96xf32> to vector<2x32xf32>
    %418 = arith.addf %416, %417 : vector<2x32xf32>
    %419 = arith.negf %418 : vector<2x32xf32>
    %420 = math.exp %419 : vector<2x32xf32>
    %cst_69 = arith.constant 1.000000e+00 : f32
    %421 = vector.broadcast %cst_69 : f32 to vector<2x32xf32>
    %422 = arith.addf %421, %420 : vector<2x32xf32>
    %423 = arith.divf %421, %422 : vector<2x32xf32>
    %424 = vector.extract_strided_slice %404 {offsets = [0, 64], sizes = [2, 32], strides = [1, 1]} : vector<2x96xf32> to vector<2x32xf32>
    %425 = vector.extract_strided_slice %407 {offsets = [0, 64], sizes = [2, 32], strides = [1, 1]} : vector<2x96xf32> to vector<2x32xf32>
    %426 = arith.mulf %415, %425 : vector<2x32xf32>
    %427 = arith.addf %424, %426 : vector<2x32xf32>
    %428 = math.tanh %427 : vector<2x32xf32>
    %cst_70 = arith.constant 1.000000e+00 : f32
    %429 = vector.broadcast %cst_70 : f32 to vector<2x32xf32>
    %430 = arith.subf %429, %423 : vector<2x32xf32>
    %431 = arith.mulf %430, %428 : vector<2x32xf32>
    %432 = arith.mulf %423, %373 : vector<2x32xf32>
    %433 = arith.addf %431, %432 : vector<2x32xf32>
    %434 = vector.extract_strided_slice %6 {offsets = [14, 0], sizes = [2, 96], strides = [1, 1]} : vector<16x96xf32> to vector<2x96xf32>
    %cst_71 = arith.constant dense<0.000000e+00> : vector<2x96xf32>
    %435 = tpu.matmul %403, %8, %cst_71 {dimension_numbers = #tpu.dot_dimension_numbers<[1], [0], [0], [1], [0, 0, 1, 1], [], []>} : vector<2x32xf32>, vector<32x96xf32>, vector<2x96xf32> -> vector<2x96xf32>
    %436 = vector.broadcast %9 : vector<1x96xf32> to vector<2x96xf32>
    %437 = arith.addf %435, %436 : vector<2x96xf32>
    %438 = vector.extract_strided_slice %434 {offsets = [0, 0], sizes = [2, 32], strides = [1, 1]} : vector<2x96xf32> to vector<2x32xf32>
    %439 = vector.extract_strided_slice %437 {offsets = [0, 0], sizes = [2, 32], strides = [1, 1]} : vector<2x96xf32> to vector<2x32xf32>
    %440 = arith.addf %438, %439 : vector<2x32xf32>
    %441 = arith.negf %440 : vector<2x32xf32>
    %442 = math.exp %441 : vector<2x32xf32>
    %cst_72 = arith.constant 1.000000e+00 : f32
    %443 = vector.broadcast %cst_72 : f32 to vector<2x32xf32>
    %444 = arith.addf %443, %442 : vector<2x32xf32>
    %445 = arith.divf %443, %444 : vector<2x32xf32>
    %446 = vector.extract_strided_slice %434 {offsets = [0, 32], sizes = [2, 32], strides = [1, 1]} : vector<2x96xf32> to vector<2x32xf32>
    %447 = vector.extract_strided_slice %437 {offsets = [0, 32], sizes = [2, 32], strides = [1, 1]} : vector<2x96xf32> to vector<2x32xf32>
    %448 = arith.addf %446, %447 : vector<2x32xf32>
    %449 = arith.negf %448 : vector<2x32xf32>
    %450 = math.exp %449 : vector<2x32xf32>
    %cst_73 = arith.constant 1.000000e+00 : f32
    %451 = vector.broadcast %cst_73 : f32 to vector<2x32xf32>
    %452 = arith.addf %451, %450 : vector<2x32xf32>
    %453 = arith.divf %451, %452 : vector<2x32xf32>
    %454 = vector.extract_strided_slice %434 {offsets = [0, 64], sizes = [2, 32], strides = [1, 1]} : vector<2x96xf32> to vector<2x32xf32>
    %455 = vector.extract_strided_slice %437 {offsets = [0, 64], sizes = [2, 32], strides = [1, 1]} : vector<2x96xf32> to vector<2x32xf32>
    %456 = arith.mulf %445, %455 : vector<2x32xf32>
    %457 = arith.addf %454, %456 : vector<2x32xf32>
    %458 = math.tanh %457 : vector<2x32xf32>
    %cst_74 = arith.constant 1.000000e+00 : f32
    %459 = vector.broadcast %cst_74 : f32 to vector<2x32xf32>
    %460 = arith.subf %459, %453 : vector<2x32xf32>
    %461 = arith.mulf %460, %458 : vector<2x32xf32>
    %462 = arith.mulf %453, %403 : vector<2x32xf32>
    %463 = arith.addf %461, %462 : vector<2x32xf32>
    %464 = vector.extract_strided_slice %7 {offsets = [0, 0], sizes = [2, 96], strides = [1, 1]} : vector<16x96xf32> to vector<2x96xf32>
    %cst_75 = arith.constant dense<0.000000e+00> : vector<2x96xf32>
    %465 = tpu.matmul %433, %10, %cst_75 {dimension_numbers = #tpu.dot_dimension_numbers<[1], [0], [0], [1], [0, 0, 1, 1], [], []>} : vector<2x32xf32>, vector<32x96xf32>, vector<2x96xf32> -> vector<2x96xf32>
    %466 = vector.broadcast %11 : vector<1x96xf32> to vector<2x96xf32>
    %467 = arith.addf %465, %466 : vector<2x96xf32>
    %468 = vector.extract_strided_slice %464 {offsets = [0, 0], sizes = [2, 32], strides = [1, 1]} : vector<2x96xf32> to vector<2x32xf32>
    %469 = vector.extract_strided_slice %467 {offsets = [0, 0], sizes = [2, 32], strides = [1, 1]} : vector<2x96xf32> to vector<2x32xf32>
    %470 = arith.addf %468, %469 : vector<2x32xf32>
    %471 = arith.negf %470 : vector<2x32xf32>
    %472 = math.exp %471 : vector<2x32xf32>
    %cst_76 = arith.constant 1.000000e+00 : f32
    %473 = vector.broadcast %cst_76 : f32 to vector<2x32xf32>
    %474 = arith.addf %473, %472 : vector<2x32xf32>
    %475 = arith.divf %473, %474 : vector<2x32xf32>
    %476 = vector.extract_strided_slice %464 {offsets = [0, 32], sizes = [2, 32], strides = [1, 1]} : vector<2x96xf32> to vector<2x32xf32>
    %477 = vector.extract_strided_slice %467 {offsets = [0, 32], sizes = [2, 32], strides = [1, 1]} : vector<2x96xf32> to vector<2x32xf32>
    %478 = arith.addf %476, %477 : vector<2x32xf32>
    %479 = arith.negf %478 : vector<2x32xf32>
    %480 = math.exp %479 : vector<2x32xf32>
    %cst_77 = arith.constant 1.000000e+00 : f32
    %481 = vector.broadcast %cst_77 : f32 to vector<2x32xf32>
    %482 = arith.addf %481, %480 : vector<2x32xf32>
    %483 = arith.divf %481, %482 : vector<2x32xf32>
    %484 = vector.extract_strided_slice %464 {offsets = [0, 64], sizes = [2, 32], strides = [1, 1]} : vector<2x96xf32> to vector<2x32xf32>
    %485 = vector.extract_strided_slice %467 {offsets = [0, 64], sizes = [2, 32], strides = [1, 1]} : vector<2x96xf32> to vector<2x32xf32>
    %486 = arith.mulf %475, %485 : vector<2x32xf32>
    %487 = arith.addf %484, %486 : vector<2x32xf32>
    %488 = math.tanh %487 : vector<2x32xf32>
    %cst_78 = arith.constant 1.000000e+00 : f32
    %489 = vector.broadcast %cst_78 : f32 to vector<2x32xf32>
    %490 = arith.subf %489, %483 : vector<2x32xf32>
    %491 = arith.mulf %490, %488 : vector<2x32xf32>
    %492 = arith.mulf %483, %433 : vector<2x32xf32>
    %493 = arith.addf %491, %492 : vector<2x32xf32>
    %494 = tpu.concatenate %43, %103, %163, %223, %283, %343, %403, %463 in 0 : vector<2x32xf32>, vector<2x32xf32>, vector<2x32xf32>, vector<2x32xf32>, vector<2x32xf32>, vector<2x32xf32>, vector<2x32xf32>, vector<2x32xf32> -> vector<16x32xf32>
    %495 = tpu.concatenate %493, %433, %373, %313, %253, %193, %133, %73 in 0 : vector<2x32xf32>, vector<2x32xf32>, vector<2x32xf32>, vector<2x32xf32>, vector<2x32xf32>, vector<2x32xf32>, vector<2x32xf32>, vector<2x32xf32> -> vector<16x32xf32>
    %c0_79 = arith.constant 0 : index
    %c0_80 = arith.constant 0 : index
    %496 = vector.load %arg7[%c0_79, %c0_80] : memref<64x4xf32, #tpu.memory_space<vmem>>, vector<64x4xf32>
    %497 = vector.extract_strided_slice %496 {offsets = [0, 0], sizes = [32, 4], strides = [1, 1]} : vector<64x4xf32> to vector<32x4xf32>
    %cst_81 = arith.constant dense<0.000000e+00> : vector<16x4xf32>
    %498 = tpu.matmul %494, %497, %cst_81 {dimension_numbers = #tpu.dot_dimension_numbers<[1], [0], [0], [1], [0, 0, 1, 1], [], []>} : vector<16x32xf32>, vector<32x4xf32>, vector<16x4xf32> -> vector<16x4xf32>
    %499 = vector.extract_strided_slice %496 {offsets = [32, 0], sizes = [32, 4], strides = [1, 1]} : vector<64x4xf32> to vector<32x4xf32>
    %cst_82 = arith.constant dense<0.000000e+00> : vector<16x4xf32>
    %500 = tpu.matmul %495, %499, %cst_82 {dimension_numbers = #tpu.dot_dimension_numbers<[1], [0], [0], [1], [0, 0, 1, 1], [], []>} : vector<16x32xf32>, vector<32x4xf32>, vector<16x4xf32> -> vector<16x4xf32>
    %501 = arith.addf %498, %500 : vector<16x4xf32>
    %c0_83 = arith.constant 0 : index
    %c0_84 = arith.constant 0 : index
    %502 = vector.load %arg8[%c0_83, %c0_84] : memref<1x4xf32, #tpu.memory_space<vmem>>, vector<1x4xf32>
    %503 = vector.broadcast %502 : vector<1x4xf32> to vector<16x4xf32>
    %504 = arith.addf %501, %503 : vector<16x4xf32>
    %c0_85 = arith.constant 0 : index
    %c0_86 = arith.constant 0 : index
    %505 = vector.load %arg9[%c0_85, %c0_86] : memref<16x4xf32, #tpu.memory_space<vmem>>, vector<16x4xf32>
    tpu.vector_store %arg9[%c0_85, %c0_86], %504 {strides = array<i32>} : memref<16x4xf32, #tpu.memory_space<vmem>>, vector<16x4xf32>,
    return
  }
}

</mosaic_0001>

<bundles_post_ra>
// kernel: tpu_custom_call.1
= control target key start
LH: loop header
LB: loop body
LE: loop exit
PB: predicated region body
PF: predicated region fallthrough
CT: control target
= control target key end

     0   :  { %14 = vsyncpa [#allocation3], 0  ;;  %s2274_s0 = inlined_call_operand.hbm [shape: f32[16,32], index: 0, kind: input, shape index: {}]   ;;  %s2275_s1 = inlined_call_operand.vmem [shape: f32[32,192], index: 1, kind: input, shape index: {}]   ;;  %s2276_s2 = inlined_call_operand.vmem [shape: f32[1,192], index: 2, kind: input, shape index: {}]   ;;  %s2277_s3 = inlined_call_operand.hbm [shape: f32[32,96], index: 3, kind: input, shape index: {}]   ;;  %s2278_s4 = inlined_call_operand.vmem [shape: f32[1,96], index: 4, kind: input, shape index: {}]   ;;  %s2279_s5 = inlined_call_operand.hbm [shape: f32[32,96], index: 5, kind: input, shape index: {}]   ;;  %s2280_s6 = inlined_call_operand.vmem [shape: f32[1,96], index: 6, kind: input, shape index: {}]   ;;  %s2281_s7 = inlined_call_operand.vmem [shape: f32[64,4], index: 7, kind: input, shape index: {}]   ;;  %s2282_s8 = inlined_call_operand.vmem [shape: f32[1,4], index: 8, kind: input, shape index: {}]   ;;  %s2283_s9 = inlined_call_operand.vmem [shape: f32[16,4], index: 9, kind: output, shape index: {}]  }
   0x1   :  { %15 = vsyncpa [#allocation5], 0  ;;  %s37_s11 = sshll.u32 %s2277_s3, 4  ;;  %s1777_s12 = smov [#allocation4]   ;;  %s38_s11 = int_to_ptr.hbm [resolvable:$true] %s37_s11 }
   0x2   :  { %s39_s13 = sshll.u32 %s1777_s12, 4  ;;  %s20_s16 = sshll.u32 %s2274_s0, 4  ;;  %s40_s13 = int_to_ptr.vmem [resolvable:$true] %s39_s13  ;;  %s21_s16 = int_to_ptr.hbm [resolvable:$true] %s20_s16 }
   0x3   :  { %s1778_s17 = smov 128   ;;  %s1779_s18 = smov 8  }
   0x4   :  { %45 = dma.hbm_to_vmem [thread:$0]  %s38_s11, 512, %s40_s13, [#allocation5], %s1778_s17, %s1778_s17, %s1779_s18  }
   0x5   :  { %s1780_s19 = smov [#allocation2]   ;;  %s52_s23 = sshll.u32 %s2279_s5, 4  ;;  %s53_s23 = int_to_ptr.hbm [resolvable:$true] %s52_s23 }
   0x6   :  { %s22_s20 = sshll.u32 %s1780_s19, 4  ;;  %s1781_s3 = smov [#allocation6]   ;;  %s23_s20 = int_to_ptr.vmem [resolvable:$true] %s22_s20 }
   0x7   :  { %28 = dma.hbm_to_vmem [thread:$0]  %s21_s16, 256, %s23_s20, [#allocation3], %s1778_s17, %s1778_s17, %s1779_s18  }
   0x8   :  { %s54_s24 = sshll.u32 %s1781_s3, 4  ;;  %s55_s24 = int_to_ptr.vmem [resolvable:$true] %s54_s24 }
   0x9   :  { %60 = dma.hbm_to_vmem [thread:$0]  %s53_s23, 512, %s55_s24, [#allocation5], %s1778_s17, %s1778_s17, %s1779_s18  }
   0xa   :  { %1773 = dma.done.wait [#allocation3], 256  }
   0xb   :  { %1774 = vsyncadd [#allocation3], 4294967040 }
   0xc   :  { %1775 = dma.done.wait [#allocation5], 1024  }
   0xd   :  { %1776 = vsyncadd [#allocation5], 4294966272  ;;  %v87_v0 = vld [vmem:[%s2275_s1 + $0x30] sm:$0xff]  ;;  %v88_v1 = vld [vmem:[%s2275_s1 + $0x38] sm:$0xff]  ;;  %vm95_vm0 = vcmask 261120   ;;  %v1782_v18 = vmov 0.0  }
   0xe   :  { %v85_v2 = vld [vmem:[%s2275_s1 + $0x20] sm:$0xff]  ;;  %1551 = vmatpush.msra.mxu2 %v87_v0  ;;  %1555 = vmatpush.msra.mxu3 %v88_v1  ;;  %v86_v3 = vld [vmem:[%s2275_s1 + $0x28] sm:$0xff]  ;;  %v83_v4 = vld [vmem:[%s2275_s1 + $0x10] sm:$0xff]  ;;  %s1783_s21 = smov 64   ;;  %s1784_s22 = smov 96  }
   0xf   :  { %v84_v5 = vld [vmem:[%s2275_s1 + $0x18] sm:$0xff]  ;;  %114 = vmatpush.msra.mxu0 %v87_v0  ;;  %137 = vmatpush.msra.mxu1 %v88_v1  ;;  %v81_v6 = vld [vmem:[%s2275_s1] sm:$0xff]  ;;  %v82_v7 = vld [vmem:[%s2275_s1 + $0x8] sm:$0xff]  ;;  %s1785_s23 = smov 32  }
  0x10   :  { %1552 = vmatpush.msra.mxu2 %v85_v2  ;;  %1556 = vmatpush.msra.mxu3 %v86_v3  ;;  %v80_v8 = vld [vmem:[#allocation2 + $0x8] sm:$0xff]  ;;  %v1875_v11 = vld [vmem:[#allocation4 + $0x10] sm:$0xff]  ;;  %v1881_v14 = vld [vmem:[#allocation4 + $0x8] sm:$0xff] }
  0x11   :  { %115 = vmatpush.msra.mxu0 %v85_v2  ;;  %138 = vmatpush.msra.mxu1 %v86_v3  ;;  %v1869_v9 = vld [vmem:[#allocation4 + $0x18] sm:$0xff]  ;;  %v1877_v12 = vld [vmem:[#allocation6 + $0x10] sm:$0xff]  ;;  %v1883_v15 = vld [vmem:[#allocation6 + $0x8] sm:$0xff] }
  0x12   :  { %1553 = vmatpush.msra.mxu2 %v83_v4  ;;  %1557 = vmatpush.msra.mxu3 %v84_v5  ;;  %v1871_v10 = vld [vmem:[#allocation6 + $0x18] sm:$0xff]  ;;  %v79_v13 = vld [vmem:[#allocation2] sm:$0xff]  ;;  %v1887_v16 = vld [vmem:[#allocation4] sm:$0xff] }
  0x13   :  { %116 = vmatpush.msra.mxu0 %v83_v4  ;;  %139 = vmatpush.msra.mxu1 %v84_v5  ;;  %v1889_v17 = vld [vmem:[#allocation6] sm:$0xff]  ;;  %v1934_v21 = vld [vmem:[%s2278_s4] ss:$0 sm:$0xff] }
  0x14   :  { %1554 = vmatpush.msra.mxu2 %v81_v6  ;;  %1558 = vmatpush.msra.mxu3 %v82_v7  ;;  %v1939_v22 = vld [vmem:[%s2280_s6] ss:$0 sm:$0xff] }
  0x15   :  { %1506 = vmatmul.msk.f32.vlgmr.msra.gmra.mxu2 %vm95_vm0, %v80_v8  ;;  %1508 = vmatmul.msk.f32.vlgmr.msra.gmra.mxu3 %vm95_vm0, %v80_v8  ;;  %v1949_v28 = vld [vmem:[%s2276_s2] sm:$0x3] }
  0x16   :  { %176 = vmatpush.msrb.mxu2 %v1869_v9  ;;  %238 = vmatpush.msrb.mxu3 %v1871_v10  ;;  %v91_v30 = vperm.slane %v1949_v28, 0  ;;  %v92_v5 = vperm.slane %v1949_v28, 1 }
  0x17   :  { %117 = vmatpush.msra.mxu0 %v81_v6  ;;  %140 = vmatpush.msra.mxu1 %v82_v7 }
  0x18   :  { %177 = vmatpush.msrb.mxu2 %v1875_v11  ;;  %239 = vmatpush.msrb.mxu3 %v1877_v12 }
  0x19   :  { %1505 = vmatmul.msk.f32.vlgmr.msra.gmra.mxu0 %vm95_vm0, %v79_v13  ;;  %1507 = vmatmul.msk.f32.vlgmr.msra.gmra.mxu1 %vm95_vm0, %v79_v13 }
  0x1a   :  { %178 = vmatpush.msrb.mxu2 %v1881_v14  ;;  %240 = vmatpush.msrb.mxu3 %v1883_v15 }
  0x1b   :  { %551 = vmatpush.msrb.mxu1 %v1871_v10  ;;  %484 = vmatpush.msrb.mxu0 %v1869_v9 }
  0x1c   :  { %179 = vmatpush.msrb.mxu2 %v1887_v16  ;;  %241 = vmatpush.msrb.mxu3 %v1889_v17 }
  0x1d   :  { %180 = vmatmul.f32.vlgmr.msrb.gmra.mxu2 %v1782_v18  ;;  %242 = vmatmul.f32.vlgmr.msrb.gmra.mxu3 %v1782_v18 }
  0x1e   :  { %393 = vmatpush.msra.mxu3 %v1871_v10  ;;  %326 = vmatpush.msra.mxu2 %v1869_v9 }
  0x1f   :  { %552 = vmatpush.msrb.mxu1 %v1877_v12  ;;  %485 = vmatpush.msrb.mxu0 %v1875_v11 }
  0x20   :  { %394 = vmatpush.msra.mxu3 %v1877_v12  ;;  %327 = vmatpush.msra.mxu2 %v1875_v11 }
  0x21   :  { %553 = vmatpush.msrb.mxu1 %v1883_v15  ;;  %486 = vmatpush.msrb.mxu0 %v1881_v14 }
  0x22   :  { %395 = vmatpush.msra.mxu3 %v1883_v15  ;;  %328 = vmatpush.msra.mxu2 %v1881_v14 }
  0x23   :  { %554 = vmatpush.msrb.mxu1 %v1889_v17  ;;  %487 = vmatpush.msrb.mxu0 %v1887_v16 }
  0x24   :  { %396 = vmatpush.msra.mxu3 %v1889_v17  ;;  %329 = vmatpush.msra.mxu2 %v1887_v16 }
  0x25   :  { %861 = vmatpush.msra.mxu1 %v1871_v10  ;;  %798 = vmatpush.msra.mxu0 %v1869_v9 }
  0x26   :  { %709 = vmatpush.msrb.mxu3 %v1871_v10  ;;  %642 = vmatpush.msrb.mxu2 %v1869_v9 }
  0x27   :  { %862 = vmatpush.msra.mxu1 %v1877_v12  ;;  %799 = vmatpush.msra.mxu0 %v1875_v11 }
  0x28   :  { %710 = vmatpush.msrb.mxu3 %v1877_v12  ;;  %643 = vmatpush.msrb.mxu2 %v1875_v11 }
  0x29   :  { %863 = vmatpush.msra.mxu1 %v1883_v15  ;;  %800 = vmatpush.msra.mxu0 %v1881_v14 }
  0x2a   :  { %711 = vmatpush.msrb.mxu3 %v1883_v15  ;;  %644 = vmatpush.msrb.mxu2 %v1881_v14 }
  0x2b   :  { %864 = vmatpush.msra.mxu1 %v1889_v17  ;;  %801 = vmatpush.msra.mxu0 %v1887_v16 }
  0x2c   :  { %712 = vmatpush.msrb.mxu3 %v1889_v17  ;;  %645 = vmatpush.msrb.mxu2 %v1887_v16 }
  0x96   :  { %v119_v29 = vpop.f32.mrf.mxu0 }
  0x97   :  { %v1952_v31 = vadd.f32 %v119_v29, %v91_v30 }
  0x98   :  { %v122_v19 = vpop.f32.mrf.mxu2  ;;  %v1929_v20 = vpop.f32.mrf.mxu3 }
  0x99   :  { %v1955_v47 = vadd.f32 %v122_v19, %v91_v30  ;;  %v1966_v6 = vadd.f32 %v1929_v20, %v92_v5 }
  0xa0   :  { %v181_v23 = vpop.f32.mrf.mxu2  ;;  %v243_v24 = vpop.f32.mrf.mxu3 }
  0xa1   :  { %v182_v25 = vadd.f32 %v1934_v21, %v181_v23  ;;  %v244_v26 = vadd.f32 %v1939_v22, %v243_v24 }
  0xa3   :  { %v247_v27 = vrot.slane %v244_v26, 2  ;;  %205 = vrot.lane.b32.xlu0 %v182_v25, %s1783_s21  ;;  %v184_v32 = vadd.f32 %v182_v25, %v1952_v31 }
  0xa5   :  { %248 = vrot.lane.b32.xlu1 %v247_v27, %s1784_s22  ;;  %291 = vrot.lane.b32.xlu2 %v247_v27, %s1785_s23  ;;  %v1509_v33 = vmul.f32 -1.442695, %v184_v32 }
  0xa7   :  { %1571 = vpow2.f32 %v1509_v33 }
  0xad   :  { %v1572_v34 = vpop.eup %1571 }
  0xae   :  { %v188_v35 = vadd.f32 1.0, %v1572_v34 }
  0xb0   :  { %1573 = vrcp.f32 %v188_v35  ;;  %v200_v41 = vand.u32 2147483648, %v188_v35  ;;  %vm194_vm2 = vweird.f32 %v188_v35  ;;  %v198_v42 = vand.u32 2147483647, %v188_v35 }
  0xb2   :  { %v201_v44 = vor.u32 1.1754944e-38, %v200_v41  ;;  %vm199_vm4 = vcmp.eq.f32.partialorder %v198_v42, 8.507059e+37 }
  0xb6   :  { %v1574_v36 = vpop.eup %1573 }
  0xb7   :  { %v190_v37 = vmul.f32 %v1574_v36, %v188_v35  ;;  %vm195_vm1 = vweird.f32 %v1574_v36 }
  0xb8   :  { %vm196_vm3 = vmor %vm194_vm2, %vm195_vm1 }
  0xb9   :  { %v191_v38 = vsub.f32 1.0, %v190_v37 }
  0xbb   :  { %v192_v39 = vmul.f32 %v1574_v36, %v191_v38 }
  0xbd   :  { %v193_v40 = vadd.f32 %v1574_v36, %v192_v39 }
  0xbf   :  { %v197_v43 = vsel %vm196_vm3, %v1574_v36, %v193_v40 }
  0xc0   :  { %v202_v46 = vsel %vm199_vm4, %v201_v44, %v197_v43 }
  0xc1   :  { %v215_v25 = vsub.f32 1.0, %v202_v46  ;;  %v221_v27 = vmul.f32 0.0, %v202_v46 }
  0xff   :  { %v292_v61 = vpop.permute.xlu2 %291 }
 0x115   :  { %v206_v45 = vpop.permute.xlu0 %205 }
 0x116   :  { %v208_v48 = vmul.f32 %v206_v45, %v202_v46 }
 0x117   :  { %v249_v49 = vpop.permute.xlu1 %248 }
 0x118   :  { %v251_v50 = vadd.f32 %v249_v49, %v1955_v47  ;;  %210 = vrot.lane.b32.xlu0 %v208_v48, %s1783_s21  ;;  %v271_v18 = vadd.f32 %v249_v49, %v1966_v6 }
 0x11a   :  { %v1510_v51 = vmul.f32 -1.442695, %v251_v50  ;;  %v1511_v19 = vmul.f32 -1.442695, %v271_v18 }
 0x11c   :  { %1575 = vpow2.f32 %v1510_v51 }
 0x122   :  { %v1576_v52 = vpop.eup %1575 }
 0x123   :  { %v255_v53 = vadd.f32 1.0, %v1576_v52 }
 0x125   :  { %1577 = vrcp.f32 %v255_v53  ;;  %v267_v57 = vand.u32 2147483648, %v255_v53  ;;  %v265_v59 = vand.u32 2147483647, %v255_v53  ;;  %vm261_vm6 = vweird.f32 %v255_v53 }
 0x127   :  { %v268_v62 = vor.u32 1.1754944e-38, %v267_v57  ;;  %vm266_vm8 = vcmp.eq.f32.partialorder %v265_v59, 8.507059e+37 }
 0x12b   :  { %v1578_v54 = vpop.eup %1577 }
 0x12c   :  { %v257_v55 = vmul.f32 %v1578_v54, %v255_v53  ;;  %vm262_vm5 = vweird.f32 %v1578_v54 }
 0x12d   :  { %vm263_vm7 = vmor %vm261_vm6, %vm262_vm5 }
 0x12e   :  { %v258_v56 = vsub.f32 1.0, %v257_v55 }
 0x130   :  { %v259_v58 = vmul.f32 %v1578_v54, %v258_v56 }
 0x132   :  { %v260_v60 = vadd.f32 %v1578_v54, %v259_v58 }
 0x134   :  { %v264_v63 = vsel %vm263_vm7, %v1578_v54, %v260_v60 }
 0x135   :  { %v269_v0 = vsel %vm266_vm8, %v268_v62, %v264_v63 }
 0x136   :  { %v294_v1 = vmul.f32 %v292_v61, %v269_v0 }
 0x138   :  { %296 = vrot.lane.b32.xlu0 %v294_v1, %s1783_s21 }
 0x18a   :  { %v211_v2 = vpop.permute.xlu0 %210 }
 0x18b   :  { %v213_v3 = vadd.f32 %v211_v2, %v1952_v31 }
 0x18d   :  { %1579 = vtanh.f32 %v213_v3 }
 0x193   :  { %v1580_v4 = vpop.eup %1579 }
 0x194   :  { %217 = vrot.lane.b32.xlu1 %v1580_v4, %s1784_s22 }
 0x1aa   :  { %v297_v7 = vpop.permute.xlu0 %296 }
 0x1ab   :  { %v299_v8 = vadd.f32 %v297_v7, %v1966_v6 }
 0x1ad   :  { %1581 = vtanh.f32 %v299_v8 }
 0x1ae   :  { %1583 = vpow2.f32 %v1511_v19 }
 0x1b3   :  { %v1582_v13 = vpop.eup %1581 }
 0x1b4   :  { %303 = vrot.lane.b32.xlu1 %v1582_v13, %s1784_s22  ;;  %v1584_v23 = vpop.eup %1583 }
 0x1b5   :  { %v275_v24 = vadd.f32 1.0, %v1584_v23 }
 0x1b7   :  { %1585 = vrcp.f32 %v275_v24  ;;  %vm281_vm9 = vweird.f32 %v275_v24  ;;  %v287_v35 = vand.u32 2147483648, %v275_v24  ;;  %v285_v37 = vand.u32 2147483647, %v275_v24 }
 0x1b9   :  { %v288_v38 = vor.u32 1.1754944e-38, %v287_v35  ;;  %vm286_vm12 = vcmp.eq.f32.partialorder %v285_v37, 8.507059e+37 }
 0x1bd   :  { %v1586_v30 = vpop.eup %1585 }
 0x1be   :  { %v277_v32 = vmul.f32 %v1586_v30, %v275_v24  ;;  %vm282_vm10 = vweird.f32 %v1586_v30 }
 0x1bf   :  { %vm283_vm11 = vmor %vm281_vm9, %vm282_vm10 }
 0x1c0   :  { %v278_v33 = vsub.f32 1.0, %v277_v32 }
 0x1c2   :  { %v279_v34 = vmul.f32 %v1586_v30, %v278_v33 }
 0x1c4   :  { %v280_v36 = vadd.f32 %v1586_v30, %v279_v34 }
 0x1c6   :  { %v284_v39 = vsel %vm283_vm11, %v1586_v30, %v280_v36 }
 0x1c7   :  { %v289_v40 = vsel %vm286_vm12, %v288_v38, %v284_v39 }
 0x1c8   :  { %v301_v41 = vsub.f32 1.0, %v289_v40  ;;  %v307_v43 = vmul.f32 0.0, %v289_v40 }
 0x206   :  { %v218_v26 = vpop.permute.xlu1 %217 }
 0x207   :  { %v220_v29 = vmul.f32 %v218_v26, %v215_v25 }
 0x209   :  { %v1971_v20 = vadd.f32 %v221_v27, %v220_v29 }
 0x20b   :  { %310 = vrot.lane.b32.xlu2 %v1971_v20, %s1784_s22 }
 0x226   :  { %v304_v42 = vpop.permute.xlu1 %303 }
 0x227   :  { %v306_v44 = vmul.f32 %v304_v42, %v301_v41 }
 0x229   :  { %v1975_v45 = vadd.f32 %v307_v43, %v306_v44 }
 0x22b   :  { %v378_v46 = vrot.slane %v1975_v45, 6 }
 0x22d   :  { %1514 = vmatmul.msk.f32.vlgmr.msra.gmra.mxu3 %vm95_vm0, %v378_v46 }
 0x22e   :  { %1018 = vmatpush.msra.mxu3 %v1871_v10 }
 0x230   :  { %1019 = vmatpush.msra.mxu3 %v1877_v12 }
 0x232   :  { %1020 = vmatpush.msra.mxu3 %v1883_v15 }
 0x234   :  { %1021 = vmatpush.msra.mxu3 %v1889_v17 }
 0x265   :  { %v311_v48 = vpop.permute.xlu2 %310 }
 0x266   :  { %1512 = vmatmul.msk.f32.vlgmr.msra.gmra.mxu2 %vm95_vm0, %v311_v48 }
 0x267   :  { %951 = vmatpush.msra.mxu2 %v1869_v9 }
 0x269   :  { %952 = vmatpush.msra.mxu2 %v1875_v11 }
 0x26b   :  { %953 = vmatpush.msra.mxu2 %v1881_v14 }
 0x26d   :  { %954 = vmatpush.msra.mxu2 %v1887_v16 }
 0x2b0   :  { %v398_v49 = vpop.f32.mrf.mxu3 }
 0x2b1   :  { %v399_v50 = vadd.f32 %v1939_v22, %v398_v49 }
 0x2b3   :  { %v402_v51 = vrot.slane %v399_v50, 4 }
 0x2b5   :  { %403 = vrot.lane.b32.xlu1 %v402_v51, %s1784_s22 }
 0x2e9   :  { %v331_v52 = vpop.f32.mrf.mxu2 }
 0x2ea   :  { %v332_v53 = vadd.f32 %v1934_v21, %v331_v52 }
 0x2ec   :  { %v335_v54 = vrot.slane %v332_v53, 6 }
 0x2ee   :  { %357 = vrot.lane.b32.xlu2 %v335_v54, %s1783_s21  ;;  %v337_v55 = vadd.f32 %v335_v54, %v1952_v31 }
 0x2f0   :  { %v1513_v56 = vmul.f32 -1.442695, %v337_v55 }
 0x2f2   :  { %1587 = vpow2.f32 %v1513_v56 }
 0x2f6   :  { %446 = vrot.lane.b32.xlu2 %v402_v51, %s1785_s23 }
 0x2f8   :  { %v1588_v57 = vpop.eup %1587 }
 0x2f9   :  { %v341_v58 = vadd.f32 1.0, %v1588_v57 }
 0x2fb   :  { %1589 = vrcp.f32 %v341_v58  ;;  %v353_v18 = vand.u32 2147483648, %v341_v58  ;;  %vm347_vm14 = vweird.f32 %v341_v58  ;;  %v351_v19 = vand.u32 2147483647, %v341_v58 }
 0x2fd   :  { %v354_v25 = vor.u32 1.1754944e-38, %v353_v18  ;;  %vm352_vm1 = vcmp.eq.f32.partialorder %v351_v19, 8.507059e+37 }
 0x301   :  { %v1590_v62 = vpop.eup %1589 }
 0x302   :  { %v343_v1 = vmul.f32 %v1590_v62, %v341_v58  ;;  %vm348_vm13 = vweird.f32 %v1590_v62  ;;  %v373_v58 = vrot.slane %v1971_v20, 6 }
 0x303   :  { %vm349_vm15 = vmor %vm347_vm14, %vm348_vm13 }
 0x304   :  { %v344_v2 = vsub.f32 1.0, %v343_v1 }
 0x306   :  { %v345_v4 = vmul.f32 %v1590_v62, %v344_v2 }
 0x308   :  { %v346_v8 = vadd.f32 %v1590_v62, %v345_v4 }
 0x30a   :  { %v350_v23 = vsel %vm349_vm15, %v1590_v62, %v346_v8 }
 0x30b   :  { %v355_v27 = vsel %vm352_vm1, %v354_v25, %v350_v23  ;;  %v2021_v25 = vpop.f32.mrf.mxu1 }
 0x30c   :  { %v367_v57 = vsub.f32 1.0, %v355_v27 }
 0x327   :  { %v404_v59 = vpop.permute.xlu1 %403 }
 0x328   :  { %v406_v60 = vadd.f32 %v404_v59, %v1955_v47  ;;  %v426_v46 = vadd.f32 %v404_v59, %v1966_v6  ;;  %v375_v59 = vmul.f32 %v373_v58, %v355_v27 }
 0x32a   :  { %v1515_v61 = vmul.f32 -1.442695, %v406_v60  ;;  %v1516_v48 = vmul.f32 -1.442695, %v426_v46 }
 0x32c   :  { %1591 = vpow2.f32 %v1515_v61 }
 0x332   :  { %v1592_v63 = vpop.eup %1591 }
 0x333   :  { %v410_v0 = vadd.f32 1.0, %v1592_v63 }
 0x335   :  { %1593 = vrcp.f32 %v410_v0  ;;  %v422_v32 = vand.u32 2147483648, %v410_v0  ;;  %vm416_vm3 = vweird.f32 %v410_v0  ;;  %v420_v33 = vand.u32 2147483647, %v410_v0 }
 0x337   :  { %v423_v35 = vor.u32 1.1754944e-38, %v422_v32  ;;  %vm421_vm5 = vcmp.eq.f32.partialorder %v420_v33, 8.507059e+37 }
 0x33b   :  { %v1594_v3 = vpop.eup %1593 }
 0x33c   :  { %v412_v7 = vmul.f32 %v1594_v3, %v410_v0  ;;  %vm417_vm2 = vweird.f32 %v1594_v3 }
 0x33d   :  { %vm418_vm4 = vmor %vm416_vm3, %vm417_vm2  ;;  %vm1405_vm3 = vcmask 1041408  }
 0x33e   :  { %v413_v13 = vsub.f32 1.0, %v412_v7  ;;  %v462_v7 = vrot.slane %v1975_v45, 2 }
 0x340   :  { %v414_v24 = vmul.f32 %v1594_v3, %v413_v13 }
 0x342   :  { %v415_v30 = vadd.f32 %v1594_v3, %v414_v24 }
 0x344   :  { %v419_v34 = vsel %vm418_vm4, %v1594_v3, %v415_v30  ;;  %vm1407_vm4 = vcmask 1043456  }
 0x345   :  { %v424_v37 = vsel %vm421_vm5, %v423_v35, %v419_v34 }
 0x348   :  { %v358_v26 = vpop.permute.xlu2 %357 }
 0x349   :  { %v360_v29 = vmul.f32 %v358_v26, %v355_v27 }
 0x34b   :  { %362 = vrot.lane.b32.xlu0 %v360_v29, %s1783_s21 }
 0x350   :  { %v447_v36 = vpop.permute.xlu2 %446 }
 0x351   :  { %v449_v38 = vmul.f32 %v447_v36, %v424_v37 }
 0x353   :  { %451 = vrot.lane.b32.xlu1 %v449_v38, %s1783_s21 }
 0x3bd   :  { %v363_v39 = vpop.permute.xlu0 %362 }
 0x3be   :  { %v365_v40 = vadd.f32 %v363_v39, %v1952_v31 }
 0x3c0   :  { %1595 = vtanh.f32 %v365_v40 }
 0x3c5   :  { %v452_v41 = vpop.permute.xlu1 %451 }
 0x3c6   :  { %v1596_v42 = vpop.eup %1595  ;;  %v454_v43 = vadd.f32 %v452_v41, %v1966_v6 }
 0x3c7   :  { %369 = vrot.lane.b32.xlu0 %v1596_v42, %s1784_s22 }
 0x3c8   :  { %1597 = vtanh.f32 %v454_v43 }
 0x3c9   :  { %1599 = vpow2.f32 %v1516_v48 }
 0x3ce   :  { %v1598_v44 = vpop.eup %1597 }
 0x3cf   :  { %458 = vrot.lane.b32.xlu0 %v1598_v44, %s1784_s22  ;;  %v1600_v49 = vpop.eup %1599 }
 0x3d0   :  { %v430_v50 = vadd.f32 1.0, %v1600_v49 }
 0x3d2   :  { %1601 = vrcp.f32 %v430_v50  ;;  %v442_v56 = vand.u32 2147483648, %v430_v50  ;;  %vm436_vm7 = vweird.f32 %v430_v50  ;;  %v440_v60 = vand.u32 2147483647, %v430_v50 }
 0x3d4   :  { %v443_v0 = vor.u32 1.1754944e-38, %v442_v56  ;;  %vm441_vm9 = vcmp.eq.f32.partialorder %v440_v60, 8.507059e+37 }
 0x3d8   :  { %v1602_v51 = vpop.eup %1601 }
 0x3d9   :  { %v432_v52 = vmul.f32 %v1602_v51, %v430_v50  ;;  %vm437_vm6 = vweird.f32 %v1602_v51 }
 0x3da   :  { %vm438_vm8 = vmor %vm436_vm7, %vm437_vm6 }
 0x3db   :  { %v433_v53 = vsub.f32 1.0, %v432_v52 }
 0x3dd   :  { %v434_v54 = vmul.f32 %v1602_v51, %v433_v53 }
 0x3df   :  { %v435_v55 = vadd.f32 %v1602_v51, %v434_v54 }
 0x3e1   :  { %v439_v63 = vsel %vm438_vm8, %v1602_v51, %v435_v55 }
 0x3e2   :  { %v444_v2 = vsel %vm441_vm9, %v443_v0, %v439_v63 }
 0x3e3   :  { %v456_v4 = vsub.f32 1.0, %v444_v2  ;;  %v464_v13 = vmul.f32 %v462_v7, %v444_v2 }
 0x439   :  { %v370_v61 = vpop.permute.xlu0 %369 }
 0x43a   :  { %v372_v62 = vmul.f32 %v370_v61, %v367_v57 }
 0x43c   :  { %v2003_v1 = vadd.f32 %v375_v59, %v372_v62 }
 0x43e   :  { %v467_v3 = vrot.slane %v2003_v1, 2 }
 0x440   :  { %468 = vrot.lane.b32.xlu2 %v467_v3, %s1784_s22 }
 0x441   :  { %v459_v8 = vpop.permute.xlu0 %458 }
 0x442   :  { %v461_v18 = vmul.f32 %v459_v8, %v456_v4 }
 0x444   :  { %v2008_v19 = vadd.f32 %v464_v13, %v461_v18 }
 0x446   :  { %v536_v23 = vrot.slane %v2008_v19, 4 }
 0x448   :  { %1519 = vmatmul.msk.f32.vlgmr.msrb.gmra.mxu1 %vm95_vm0, %v536_v23 }
 0x449   :  { %1176 = vmatpush.msrb.mxu1 %v1871_v10 }
 0x44b   :  { %1177 = vmatpush.msrb.mxu1 %v1877_v12 }
 0x44d   :  { %1178 = vmatpush.msrb.mxu1 %v1883_v15 }
 0x44f   :  { %1179 = vmatpush.msrb.mxu1 %v1889_v17 }
 0x49a   :  { %v469_v24 = vpop.permute.xlu2 %468 }
 0x49b   :  { %1517 = vmatmul.msk.f32.vlgmr.msrb.gmra.mxu0 %vm95_vm0, %v469_v24 }
 0x49c   :  { %1109 = vmatpush.msrb.mxu0 %v1869_v9 }
 0x49e   :  { %1110 = vmatpush.msrb.mxu0 %v1875_v11 }
 0x4a0   :  { %1111 = vmatpush.msrb.mxu0 %v1881_v14 }
 0x4a2   :  { %1112 = vmatpush.msrb.mxu0 %v1887_v16 }
 0x4c5   :  { %v556_v26 = vpop.f32.mrf.mxu1 }
 0x4c6   :  { %v557_v27 = vadd.f32 %v1939_v22, %v556_v26 }
 0x4c8   :  { %v560_v29 = vrot.slane %v557_v27, 6 }
 0x4ca   :  { %561 = vrot.lane.b32.xlu0 %v560_v29, %s1784_s22 }
 0x518   :  { %v489_v30 = vpop.f32.mrf.mxu0 }
 0x519   :  { %v490_v32 = vadd.f32 %v1934_v21, %v489_v30 }
 0x51b   :  { %v493_v33 = vrot.slane %v490_v32, 4 }
 0x51d   :  { %515 = vrot.lane.b32.xlu1 %v493_v33, %s1783_s21  ;;  %v495_v34 = vadd.f32 %v493_v33, %v1952_v31 }
 0x51f   :  { %v1518_v35 = vmul.f32 -1.442695, %v495_v34  ;;  %v531_v34 = vrot.slane %v2003_v1, 6 }
 0x521   :  { %1603 = vpow2.f32 %v1518_v35 }
 0x525   :  { %604 = vrot.lane.b32.xlu1 %v560_v29, %s1785_s23 }
 0x527   :  { %v1604_v39 = vpop.eup %1603 }
 0x528   :  { %v499_v40 = vadd.f32 1.0, %v1604_v39 }
 0x52a   :  { %v511_v53 = vand.u32 2147483648, %v499_v40  ;;  %vm505_vm11 = vweird.f32 %v499_v40  ;;  %v509_v54 = vand.u32 2147483647, %v499_v40 }
 0x52c   :  { %v512_v57 = vor.u32 1.1754944e-38, %v511_v53  ;;  %vm510_vm13 = vcmp.eq.f32.partialorder %v509_v54, 8.507059e+37  ;;  %v620_v53 = vrot.slane %v2008_v19, 2 }
 0x53c   :  { %v562_v36 = vpop.permute.xlu0 %561 }
 0x53d   :  { %v564_v37 = vadd.f32 %v562_v36, %v1955_v47  ;;  %v584_v27 = vadd.f32 %v562_v36, %v1966_v6 }
 0x53f   :  { %v1520_v38 = vmul.f32 -1.442695, %v564_v37  ;;  %v1521_v29 = vmul.f32 -1.442695, %v584_v27 }
 0x541   :  { %1605 = vpow2.f32 %v1520_v38 }
 0x542   :  { %1607 = vrcp.f32 %v499_v40 }
 0x547   :  { %v1606_v41 = vpop.eup %1605 }
 0x548   :  { %v568_v42 = vadd.f32 1.0, %v1606_v41  ;;  %v1608_v43 = vpop.eup %1607 }
 0x549   :  { %v501_v44 = vmul.f32 %v1608_v43, %v499_v40  ;;  %vm506_vm10 = vweird.f32 %v1608_v43  ;;  %v1406_v40 = vsel %vm1405_vm3, %v1971_v20, %v2003_v1 }
 0x54a   :  { %1609 = vrcp.f32 %v568_v42  ;;  %vm507_vm12 = vmor %vm505_vm11, %vm506_vm10  ;;  %v580_v62 = vand.u32 2147483648, %v568_v42  ;;  %vm574_vm15 = vweird.f32 %v568_v42  ;;  %v578_v63 = vand.u32 2147483647, %v568_v42 }
 0x54b   :  { %v502_v46 = vsub.f32 1.0, %v501_v44 }
 0x54c   :  { %v581_v2 = vor.u32 1.1754944e-38, %v580_v62  ;;  %vm579_vm2 = vcmp.eq.f32.partialorder %v578_v63, 8.507059e+37 }
 0x54d   :  { %v503_v49 = vmul.f32 %v1608_v43, %v502_v46 }
 0x54f   :  { %v504_v51 = vadd.f32 %v1608_v43, %v503_v49 }
 0x550   :  { %v1610_v48 = vpop.eup %1609 }
 0x551   :  { %v570_v50 = vmul.f32 %v1610_v48, %v568_v42  ;;  %v508_v55 = vsel %vm507_vm12, %v1608_v43, %v504_v51  ;;  %vm575_vm14 = vweird.f32 %v1610_v48 }
 0x552   :  { %v513_v60 = vsel %vm510_vm13, %v512_v57, %v508_v55  ;;  %vm576_vm1 = vmor %vm574_vm15, %vm575_vm14 }
 0x553   :  { %v571_v52 = vsub.f32 1.0, %v570_v50  ;;  %v525_v33 = vsub.f32 1.0, %v513_v60  ;;  %v533_v37 = vmul.f32 %v531_v34, %v513_v60 }
 0x555   :  { %v572_v56 = vmul.f32 %v1610_v48, %v571_v52 }
 0x557   :  { %v573_v59 = vadd.f32 %v1610_v48, %v572_v56 }
 0x559   :  { %v577_v0 = vsel %vm576_vm1, %v1610_v48, %v573_v59 }
 0x55a   :  { %v582_v4 = vsel %vm579_vm2, %v581_v2, %v577_v0 }
 0x58f   :  { %v516_v58 = vpop.permute.xlu1 %515 }
 0x590   :  { %v518_v61 = vmul.f32 %v516_v58, %v513_v60 }
 0x592   :  { %520 = vrot.lane.b32.xlu2 %v518_v61, %s1783_s21 }
 0x597   :  { %v605_v3 = vpop.permute.xlu1 %604 }
 0x598   :  { %v607_v7 = vmul.f32 %v605_v3, %v582_v4 }
 0x59a   :  { %609 = vrot.lane.b32.xlu0 %v607_v7, %s1783_s21 }
 0x5ec   :  { %v521_v8 = vpop.permute.xlu2 %520 }
 0x5ed   :  { %v523_v13 = vadd.f32 %v521_v8, %v1952_v31 }
 0x5ef   :  { %1611 = vtanh.f32 %v523_v13 }
 0x5f5   :  { %v1612_v18 = vpop.eup %1611 }
 0x5f6   :  { %527 = vrot.lane.b32.xlu2 %v1612_v18, %s1784_s22 }
 0x60c   :  { %v610_v23 = vpop.permute.xlu0 %609 }
 0x60d   :  { %v612_v24 = vadd.f32 %v610_v23, %v1966_v6 }
 0x60f   :  { %1613 = vtanh.f32 %v612_v24 }
 0x610   :  { %1615 = vpow2.f32 %v1521_v29 }
 0x615   :  { %v1614_v26 = vpop.eup %1613 }
 0x616   :  { %616 = vrot.lane.b32.xlu2 %v1614_v26, %s1784_s22  ;;  %v1616_v30 = vpop.eup %1615 }
 0x617   :  { %v588_v32 = vadd.f32 1.0, %v1616_v30 }
 0x619   :  { %1617 = vrcp.f32 %v588_v32  ;;  %v600_v49 = vand.u32 2147483648, %v588_v32  ;;  %vm594_vm6 = vweird.f32 %v588_v32  ;;  %v598_v50 = vand.u32 2147483647, %v588_v32 }
 0x61b   :  { %v601_v20 = vor.u32 1.1754944e-38, %v600_v49  ;;  %vm599_vm8 = vcmp.eq.f32.partialorder %v598_v50, 8.507059e+37 }
 0x61f   :  { %v1618_v42 = vpop.eup %1617 }
 0x620   :  { %v590_v43 = vmul.f32 %v1618_v42, %v588_v32  ;;  %vm595_vm5 = vweird.f32 %v1618_v42 }
 0x621   :  { %vm596_vm7 = vmor %vm594_vm6, %vm595_vm5 }
 0x622   :  { %v591_v44 = vsub.f32 1.0, %v590_v43 }
 0x624   :  { %v592_v46 = vmul.f32 %v1618_v42, %v591_v44 }
 0x626   :  { %v593_v48 = vadd.f32 %v1618_v42, %v592_v46 }
 0x628   :  { %v597_v51 = vsel %vm596_vm7, %v1618_v42, %v593_v48  ;;  %vm1409_vm7 = vcmask 1045504  }
 0x629   :  { %v602_v1 = vsel %vm599_vm8, %v601_v20, %v597_v51 }
 0x62a   :  { %v614_v52 = vsub.f32 1.0, %v602_v1  ;;  %v622_v55 = vmul.f32 %v620_v53, %v602_v1 }
 0x650   :  { %v528_v35 = vpop.permute.xlu2 %527 }
 0x651   :  { %v530_v38 = vmul.f32 %v528_v35, %v525_v33 }
 0x653   :  { %v2038_v39 = vadd.f32 %v533_v37, %v530_v38 }
 0x655   :  { %v625_v36 = vrot.slane %v2038_v39, 4  ;;  %v2046_v41 = vsel %vm1407_vm4, %v1406_v40, %v2038_v39 }
 0x657   :  { %626 = vrot.lane.b32.xlu1 %v625_v36, %s1784_s22 }
 0x670   :  { %v617_v54 = vpop.permute.xlu2 %616 }
 0x671   :  { %v619_v56 = vmul.f32 %v617_v54, %v614_v52 }
 0x673   :  { %v2050_v57 = vadd.f32 %v622_v55, %v619_v56 }
 0x675   :  { %v694_v58 = vrot.slane %v2050_v57, 2 }
 0x677   :  { %1524 = vmatmul.msk.f32.vlgmr.msrb.gmra.mxu3 %vm95_vm0, %v694_v58 }
 0x678   :  { %1334 = vmatpush.msrb.mxu3 %v1871_v10 }
 0x67a   :  { %1335 = vmatpush.msrb.mxu3 %v1877_v12 }
 0x67c   :  { %1336 = vmatpush.msrb.mxu3 %v1883_v15 }
 0x67e   :  { %1337 = vmatpush.msrb.mxu3 %v1889_v17 }
 0x6c9   :  { %v627_v60 = vpop.permute.xlu1 %626 }
 0x6ca   :  { %1522 = vmatmul.msk.f32.vlgmr.msrb.gmra.mxu2 %vm95_vm0, %v627_v60 }
 0x6cb   :  { %1267 = vmatpush.msrb.mxu2 %v1869_v9 }
 0x6cd   :  { %1268 = vmatpush.msrb.mxu2 %v1875_v11 }
 0x6cf   :  { %1269 = vmatpush.msrb.mxu2 %v1881_v14 }
 0x6d1   :  { %1270 = vmatpush.msrb.mxu2 %v1887_v16 }
 0x6fa   :  { %v714_v61 = vpop.f32.mrf.mxu3 }
 0x6fb   :  { %v715_v10 = vadd.f32 %v1939_v22, %v714_v61 }
 0x6fd   :  { %718 = vrot.lane.b32.xlu1 %v715_v10, %s1784_s22 }
 0x74d   :  { %v647_v12 = vpop.f32.mrf.mxu2 }
 0x74e   :  { %v648_v15 = vadd.f32 %v1934_v21, %v647_v12 }
 0x750   :  { %v651_v17 = vrot.slane %v648_v15, 2 }
 0x752   :  { %673 = vrot.lane.b32.xlu0 %v651_v17, %s1783_s21  ;;  %v653_v9 = vadd.f32 %v651_v17, %v1952_v31 }
 0x754   :  { %v1523_v11 = vmul.f32 -1.442695, %v653_v9  ;;  %v689_v9 = vrot.slane %v2038_v39, 6 }
 0x756   :  { %1619 = vpow2.f32 %v1523_v11 }
 0x75a   :  { %761 = vrot.lane.b32.xlu0 %v715_v10, %s1785_s23 }
 0x75c   :  { %v1620_v62 = vpop.eup %1619 }
 0x75d   :  { %v657_v63 = vadd.f32 1.0, %v1620_v62 }
 0x75f   :  { %v669_v26 = vand.u32 2147483648, %v657_v63  ;;  %vm663_vm10 = vweird.f32 %v657_v63  ;;  %v667_v27 = vand.u32 2147483647, %v657_v63 }
 0x761   :  { %v670_v32 = vor.u32 1.1754944e-38, %v669_v26  ;;  %vm668_vm12 = vcmp.eq.f32.partialorder %v667_v27, 8.507059e+37 }
 0x76f   :  { %v719_v59 = vpop.permute.xlu1 %718 }
 0x770   :  { %v721_v14 = vadd.f32 %v719_v59, %v1955_v47  ;;  %v741_v52 = vadd.f32 %v719_v59, %v1966_v6 }
 0x772   :  { %v1525_v16 = vmul.f32 -1.442695, %v721_v14  ;;  %v1526_v53 = vmul.f32 -1.442695, %v741_v52 }
 0x774   :  { %1621 = vpow2.f32 %v1525_v16 }
 0x775   :  { %1623 = vrcp.f32 %v657_v63 }
 0x77a   :  { %v1622_v0 = vpop.eup %1621 }
 0x77b   :  { %v725_v2 = vadd.f32 1.0, %v1622_v0  ;;  %v1624_v3 = vpop.eup %1623 }
 0x77c   :  { %v659_v4 = vmul.f32 %v1624_v3, %v657_v63  ;;  %vm664_vm9 = vweird.f32 %v1624_v3 }
 0x77d   :  { %1625 = vrcp.f32 %v725_v2  ;;  %vm665_vm11 = vmor %vm663_vm10, %vm664_vm9  ;;  %v737_v38 = vand.u32 2147483648, %v725_v2  ;;  %vm731_vm14 = vweird.f32 %v725_v2  ;;  %v735_v40 = vand.u32 2147483647, %v725_v2 }
 0x77e   :  { %v660_v7 = vsub.f32 1.0, %v659_v4 }
 0x77f   :  { %v738_v42 = vor.u32 1.1754944e-38, %v737_v38  ;;  %vm736_vm1 = vcmp.eq.f32.partialorder %v735_v40, 8.507059e+37 }
 0x780   :  { %v661_v13 = vmul.f32 %v1624_v3, %v660_v7 }
 0x782   :  { %v662_v23 = vadd.f32 %v1624_v3, %v661_v13 }
 0x783   :  { %v1626_v8 = vpop.eup %1625 }
 0x784   :  { %v727_v18 = vmul.f32 %v1626_v8, %v725_v2  ;;  %v666_v29 = vsel %vm665_vm11, %v1624_v3, %v662_v23  ;;  %vm732_vm13 = vweird.f32 %v1626_v8 }
 0x785   :  { %v671_v33 = vsel %vm668_vm12, %v670_v32, %v666_v29  ;;  %vm733_vm15 = vmor %vm731_vm14, %vm732_vm13 }
 0x786   :  { %v728_v24 = vsub.f32 1.0, %v727_v18  ;;  %v683_v17 = vsub.f32 1.0, %v671_v33 }
 0x788   :  { %v729_v30 = vmul.f32 %v1626_v8, %v728_v24 }
 0x78a   :  { %v730_v37 = vadd.f32 %v1626_v8, %v729_v30 }
 0x78c   :  { %v734_v36 = vsel %vm733_vm15, %v1626_v8, %v730_v37 }
 0x78d   :  { %v739_v43 = vsel %vm736_vm1, %v738_v42, %v734_v36 }
 0x7c4   :  { %v674_v34 = vpop.permute.xlu0 %673 }
 0x7c5   :  { %v676_v35 = vmul.f32 %v674_v34, %v671_v33 }
 0x7c7   :  { %678 = vrot.lane.b32.xlu2 %v676_v35, %s1783_s21 }
 0x7cc   :  { %v762_v44 = vpop.permute.xlu0 %761 }
 0x7cd   :  { %v764_v46 = vmul.f32 %v762_v44, %v739_v43 }
 0x7cf   :  { %766 = vrot.lane.b32.xlu2 %v764_v46, %s1783_s21 }
 0x821   :  { %v679_v48 = vpop.permute.xlu2 %678 }
 0x822   :  { %v681_v49 = vadd.f32 %v679_v48, %v1952_v31 }
 0x824   :  { %1627 = vtanh.f32 %v681_v49 }
 0x829   :  { %v767_v50 = vpop.permute.xlu2 %766 }
 0x82a   :  { %v1628_v51 = vpop.eup %1627  ;;  %v769_v20 = vadd.f32 %v767_v50, %v1966_v6  ;;  %v691_v6 = vmul.f32 %v689_v9, %v671_v33 }
 0x82b   :  { %685 = vrot.lane.b32.xlu1 %v1628_v51, %s1784_s22 }
 0x82c   :  { %1629 = vtanh.f32 %v769_v20 }
 0x82d   :  { %1631 = vpow2.f32 %v1526_v53 }
 0x832   :  { %v1630_v1 = vpop.eup %1629 }
 0x833   :  { %773 = vrot.lane.b32.xlu1 %v1630_v1, %s1784_s22  ;;  %v1632_v54 = vpop.eup %1631 }
 0x834   :  { %v745_v55 = vadd.f32 1.0, %v1632_v54 }
 0x836   :  { %1633 = vrcp.f32 %v745_v55  ;;  %v757_v15 = vand.u32 2147483648, %v745_v55  ;;  %vm751_vm5 = vweird.f32 %v745_v55  ;;  %v755_v11 = vand.u32 2147483647, %v745_v55 }
 0x838   :  { %v758_v62 = vor.u32 1.1754944e-38, %v757_v15  ;;  %vm756_vm8 = vcmp.eq.f32.partialorder %v755_v11, 8.507059e+37  ;;  %v2111_v11 = vadd.f32 %v2021_v25, %v92_v5 }
 0x83c   :  { %v1634_v56 = vpop.eup %1633 }
 0x83d   :  { %v747_v60 = vmul.f32 %v1634_v56, %v745_v55  ;;  %vm752_vm2 = vweird.f32 %v1634_v56 }
 0x83e   :  { %vm753_vm6 = vmor %vm751_vm5, %vm752_vm2 }
 0x83f   :  { %v748_v61 = vsub.f32 1.0, %v747_v60 }
 0x841   :  { %v749_v10 = vmul.f32 %v1634_v56, %v748_v61 }
 0x843   :  { %v750_v12 = vadd.f32 %v1634_v56, %v749_v10 }
 0x845   :  { %v754_v16 = vsel %vm753_vm6, %v1634_v56, %v750_v12 }
 0x846   :  { %v759_v0 = vsel %vm756_vm8, %v758_v62, %v754_v16 }
 0x847   :  { %v771_v39 = vsub.f32 1.0, %v759_v0  ;;  %v778_v7 = vmul.f32 %v759_v0, %v694_v58 }
 0x89d   :  { %v686_v14 = vpop.permute.xlu1 %685 }
 0x89e   :  { %v688_v59 = vmul.f32 %v686_v14, %v683_v17 }
 0x8a0   :  { %v2080_v63 = vadd.f32 %v691_v6, %v688_v59 }
 0x8a2   :  { %v781_v2 = vrot.slane %v2080_v63, 6  ;;  %v2086_v3 = vsel %vm1409_vm7, %v2046_v41, %v2080_v63 }
 0x8a4   :  { %782 = vrot.lane.b32.xlu0 %v781_v2, %s1784_s22 }
 0x8a5   :  { %v774_v4 = vpop.permute.xlu1 %773 }
 0x8a6   :  { %v776_v8 = vmul.f32 %v774_v4, %v771_v39 }
 0x8a8   :  { %v2093_v13 = vadd.f32 %v778_v7, %v776_v8 }
 0x8aa   :  { %1529 = vmatmul.msk.f32.vlgmr.msra.gmra.mxu1 %vm95_vm0, %v2093_v13 }
 0x916   :  { %v783_v18 = vpop.permute.xlu0 %782 }
 0x917   :  { %1527 = vmatmul.msk.f32.vlgmr.msra.gmra.mxu0 %vm95_vm0, %v783_v18 }
 0x927   :  { %v866_v41 = vpop.f32.mrf.mxu1 }
 0x928   :  { %v867_v23 = vadd.f32 %v1939_v22, %v866_v41 }
 0x92a   :  { %v870_v24 = vrot.slane %v867_v23, 2 }
 0x92c   :  { %871 = vrot.lane.b32.xlu0 %v870_v24, %s1784_s22 }
 0x994   :  { %v803_v26 = vpop.f32.mrf.mxu0 }
 0x995   :  { %v804_v27 = vadd.f32 %v1934_v21, %v803_v26 }
 0x997   :  { %827 = vrot.lane.b32.xlu2 %v804_v27, %s1783_s21  ;;  %v806_v58 = vadd.f32 %v804_v27, %v1955_v47 }
 0x999   :  { %v1528_v29 = vmul.f32 -1.442695, %v806_v58 }
 0x99b   :  { %1635 = vpow2.f32 %v1528_v29 }
 0x99e   :  { %v872_v30 = vpop.permute.xlu0 %871 }
 0x99f   :  { %914 = vrot.lane.b32.xlu2 %v870_v24, %s1785_s23  ;;  %v874_v32 = vadd.f32 %v872_v30, %v1952_v31  ;;  %v894_v62 = vadd.f32 %v872_v30, %v2111_v11 }
 0x9a1   :  { %v1530_v33 = vmul.f32 -1.442695, %v874_v32  ;;  %v1636_v34 = vpop.eup %1635  ;;  %v1531_v0 = vmul.f32 -1.442695, %v894_v62 }
 0x9a2   :  { %v810_v22 = vadd.f32 1.0, %v1636_v34  ;;  %v930_v34 = vrot.slane %v2093_v13, 2 }
 0x9a3   :  { %1637 = vpow2.f32 %v1530_v33 }
 0x9a4   :  { %1639 = vrcp.f32 %v810_v22  ;;  %v822_v48 = vand.u32 2147483648, %v810_v22  ;;  %vm816_vm10 = vweird.f32 %v810_v22  ;;  %v820_v49 = vand.u32 2147483647, %v810_v22 }
 0x9a6   :  { %v823_v20 = vor.u32 1.1754944e-38, %v822_v48  ;;  %vm821_vm12 = vcmp.eq.f32.partialorder %v820_v49, 8.507059e+37 }
 0x9a9   :  { %v1638_v35 = vpop.eup %1637 }
 0x9aa   :  { %v878_v37 = vadd.f32 1.0, %v1638_v35  ;;  %v1640_v38 = vpop.eup %1639 }
 0x9ab   :  { %v812_v21 = vmul.f32 %v1640_v38, %v810_v22  ;;  %vm817_vm9 = vweird.f32 %v1640_v38 }
 0x9ac   :  { %1641 = vrcp.f32 %v878_v37  ;;  %vm818_vm11 = vmor %vm816_vm10, %vm817_vm9  ;;  %v890_v55 = vand.u32 2147483648, %v878_v37  ;;  %vm884_vm14 = vweird.f32 %v878_v37  ;;  %v888_v56 = vand.u32 2147483647, %v878_v37 }
 0x9ad   :  { %v813_v40 = vsub.f32 1.0, %v812_v21 }
 0x9ae   :  { %v891_v61 = vor.u32 1.1754944e-38, %v890_v55  ;;  %vm889_vm1 = vcmp.eq.f32.partialorder %v888_v56, 8.507059e+37 }
 0x9af   :  { %v814_v42 = vmul.f32 %v1640_v38, %v813_v40  ;;  %v2132_v40 = vld [vmem:[%s2280_s6] ss:$0 sm:$0xff] }
 0x9b1   :  { %v815_v44 = vadd.f32 %v1640_v38, %v814_v42 }
 0x9b2   :  { %v1642_v36 = vpop.eup %1641 }
 0x9b3   :  { %v880_v43 = vmul.f32 %v1642_v36, %v878_v37  ;;  %v819_v50 = vsel %vm818_vm11, %v1640_v38, %v815_v44  ;;  %vm885_vm13 = vweird.f32 %v1642_v36  ;;  %v2139_v44 = vld [vmem:[%s2278_s4] ss:$0 sm:$0xff] }
 0x9b4   :  { %v824_v52 = vsel %vm821_vm12, %v823_v20, %v819_v50  ;;  %vm886_vm15 = vmor %vm884_vm14, %vm885_vm13 }
 0x9b5   :  { %v881_v46 = vsub.f32 1.0, %v880_v43  ;;  %v837_v41 = vsub.f32 1.0, %v824_v52  ;;  %v844_v26 = vmul.f32 %v824_v52, %v781_v2 }
 0x9b7   :  { %v882_v51 = vmul.f32 %v1642_v36, %v881_v46 }
 0x9b9   :  { %v883_v54 = vadd.f32 %v1642_v36, %v882_v51 }
 0x9bb   :  { %v887_v60 = vsel %vm886_vm15, %v1642_v36, %v883_v54 }
 0x9bc   :  { %v892_v12 = vsel %vm889_vm1, %v891_v61, %v887_v60 }
 0x9f1   :  { %v828_v1 = vpop.permute.xlu2 %827 }
 0x9f2   :  { %v830_v53 = vmul.f32 %v828_v1, %v824_v52 }
 0x9f4   :  { %832 = vrot.lane.b32.xlu1 %v830_v53, %s1783_s21 }
 0x9f9   :  { %v915_v10 = vpop.permute.xlu2 %914 }
 0x9fa   :  { %v917_v15 = vmul.f32 %v915_v10, %v892_v12 }
 0x9fc   :  { %919 = vrot.lane.b32.xlu1 %v917_v15, %s1783_s21 }
 0xa66   :  { %v833_v17 = vpop.permute.xlu1 %832 }
 0xa67   :  { %v835_v9 = vadd.f32 %v833_v17, %v1955_v47 }
 0xa69   :  { %1643 = vtanh.f32 %v835_v9 }
 0xa6e   :  { %v920_v14 = vpop.permute.xlu1 %919 }
 0xa6f   :  { %v1644_v6 = vpop.eup %1643  ;;  %v922_v59 = vadd.f32 %v920_v14, %v2111_v11 }
 0xa70   :  { %839 = vrot.lane.b32.xlu0 %v1644_v6, %s1784_s22 }
 0xa71   :  { %1645 = vtanh.f32 %v922_v59 }
 0xa72   :  { %1647 = vpow2.f32 %v1531_v0 }
 0xa77   :  { %v1646_v16 = vpop.eup %1645 }
 0xa78   :  { %926 = vrot.lane.b32.xlu0 %v1646_v16, %s1784_s22  ;;  %v1648_v39 = vpop.eup %1647 }
 0xa79   :  { %v898_v4 = vadd.f32 1.0, %v1648_v39 }
 0xa7b   :  { %1649 = vrcp.f32 %v898_v4  ;;  %v910_v18 = vand.u32 2147483648, %v898_v4  ;;  %vm904_vm5 = vweird.f32 %v898_v4  ;;  %v908_v23 = vand.u32 2147483647, %v898_v4 }
 0xa7d   :  { %v911_v29 = vor.u32 1.1754944e-38, %v910_v18  ;;  %vm909_vm8 = vcmp.eq.f32.partialorder %v908_v23, 8.507059e+37 }
 0xa81   :  { %v1650_v28 = vpop.eup %1649 }
 0xa82   :  { %v900_v5 = vmul.f32 %v1650_v28, %v898_v4  ;;  %vm905_vm2 = vweird.f32 %v1650_v28 }
 0xa83   :  { %vm906_vm6 = vmor %vm904_vm5, %vm905_vm2 }
 0xa84   :  { %v901_v25 = vsub.f32 1.0, %v900_v5 }
 0xa86   :  { %v902_v7 = vmul.f32 %v1650_v28, %v901_v25 }
 0xa88   :  { %v903_v8 = vadd.f32 %v1650_v28, %v902_v7 }
 0xa8a   :  { %v907_v58 = vsel %vm906_vm6, %v1650_v28, %v903_v8 }
 0xa8b   :  { %v912_v32 = vsel %vm909_vm8, %v911_v29, %v907_v58 }
 0xa8c   :  { %v924_v33 = vsub.f32 1.0, %v912_v32  ;;  %v932_v35 = vmul.f32 %v930_v34, %v912_v32 }
 0xae2   :  { %v840_v24 = vpop.permute.xlu0 %839 }
 0xae3   :  { %v842_v27 = vmul.f32 %v840_v24, %v837_v41 }
 0xae5   :  { %v2119_v30 = vadd.f32 %v844_v26, %v842_v27 }
 0xae7   :  { %935 = vrot.lane.b32.xlu2 %v2119_v30, %s1784_s22 }
 0xaea   :  { %v927_v22 = vpop.permute.xlu0 %926 }
 0xaeb   :  { %v929_v37 = vmul.f32 %v927_v22, %v924_v33 }
 0xaed   :  { %v2124_v38 = vadd.f32 %v932_v35, %v929_v37 }
 0xaef   :  { %v1003_v63 = vrot.slane %v2124_v38, 6 }
 0xaf1   :  { %1534 = vmatmul.msk.f32.vlgmr.msra.gmra.mxu3 %vm95_vm0, %v1003_v63 }
 0xb41   :  { %v936_v2 = vpop.permute.xlu2 %935 }
 0xb42   :  { %1532 = vmatmul.msk.f32.vlgmr.msra.gmra.mxu2 %vm95_vm0, %v936_v2 }
 0xb74   :  { %v1023_v21 = vpop.f32.mrf.mxu3 }
 0xb75   :  { %v1024_v36 = vadd.f32 %v2132_v40, %v1023_v21 }
 0xb77   :  { %v1027_v42 = vrot.slane %v1024_v36, 4 }
 0xb79   :  { %1028 = vrot.lane.b32.xlu2 %v1027_v42, %s1784_s22 }
 0xbc5   :  { %v956_v43 = vpop.f32.mrf.mxu2 }
 0xbc6   :  { %v957_v46 = vadd.f32 %v2139_v44, %v956_v43 }
 0xbc8   :  { %v960_v48 = vrot.slane %v957_v46, 6  ;;  %v998_v46 = vrot.slane %v2119_v30, 6 }
 0xbca   :  { %982 = vrot.lane.b32.xlu1 %v960_v48, %s1783_s21  ;;  %v962_v49 = vadd.f32 %v960_v48, %v1955_v47 }
 0xbcc   :  { %v1533_v50 = vmul.f32 -1.442695, %v962_v49 }
 0xbce   :  { %1651 = vpow2.f32 %v1533_v50 }
 0xbd2   :  { %1071 = vrot.lane.b32.xlu1 %v1027_v42, %s1785_s23 }
 0xbd3   :  { %v1029_v51 = vpop.permute.xlu2 %1028 }
 0xbd4   :  { %v1031_v20 = vadd.f32 %v1029_v51, %v1952_v31  ;;  %v1652_v52 = vpop.eup %1651  ;;  %v1051_v33 = vadd.f32 %v1029_v51, %v2111_v11 }
 0xbd5   :  { %v966_v53 = vadd.f32 1.0, %v1652_v52 }
 0xbd6   :  { %v1535_v1 = vmul.f32 -1.442695, %v1031_v20  ;;  %v1536_v34 = vmul.f32 -1.442695, %v1051_v33 }
 0xbd7   :  { %v978_v14 = vand.u32 2147483648, %v966_v53  ;;  %vm972_vm10 = vweird.f32 %v966_v53  ;;  %v976_v6 = vand.u32 2147483647, %v966_v53 }
 0xbd8   :  { %1653 = vpow2.f32 %v1535_v1 }
 0xbd9   :  { %1655 = vrcp.f32 %v966_v53  ;;  %v979_v62 = vor.u32 1.1754944e-38, %v978_v14  ;;  %vm977_vm12 = vcmp.eq.f32.partialorder %v976_v6, 8.507059e+37 }
 0xbde   :  { %v1654_v54 = vpop.eup %1653 }
 0xbdf   :  { %v1035_v55 = vadd.f32 1.0, %v1654_v54  ;;  %v1656_v56 = vpop.eup %1655 }
 0xbe0   :  { %v968_v60 = vmul.f32 %v1656_v56, %v966_v53  ;;  %vm973_vm9 = vweird.f32 %v1656_v56 }
 0xbe1   :  { %1657 = vrcp.f32 %v1035_v55  ;;  %vm974_vm11 = vmor %vm972_vm10, %vm973_vm9  ;;  %v1047_v5 = vand.u32 2147483648, %v1035_v55  ;;  %vm1041_vm14 = vweird.f32 %v1035_v55  ;;  %v1045_v25 = vand.u32 2147483647, %v1035_v55 }
 0xbe2   :  { %v969_v61 = vsub.f32 1.0, %v968_v60 }
 0xbe3   :  { %v1048_v8 = vor.u32 1.1754944e-38, %v1047_v5  ;;  %vm1046_vm1 = vcmp.eq.f32.partialorder %v1045_v25, 8.507059e+37 }
 0xbe4   :  { %v970_v12 = vmul.f32 %v1656_v56, %v969_v61 }
 0xbe6   :  { %v971_v17 = vadd.f32 %v1656_v56, %v970_v12 }
 0xbe7   :  { %v1658_v10 = vpop.eup %1657 }
 0xbe8   :  { %v1037_v15 = vmul.f32 %v1658_v10, %v1035_v55  ;;  %v975_v59 = vsel %vm974_vm11, %v1656_v56, %v971_v17  ;;  %vm1042_vm13 = vweird.f32 %v1658_v10  ;;  %v1087_v56 = vrot.slane %v2124_v38, 2 }
 0xbe9   :  { %v980_v39 = vsel %vm977_vm12, %v979_v62, %v975_v59  ;;  %vm1043_vm15 = vmor %vm1041_vm14, %vm1042_vm13 }
 0xbea   :  { %v1038_v9 = vsub.f32 1.0, %v1037_v15  ;;  %v992_v43 = vsub.f32 1.0, %v980_v39  ;;  %v1000_v50 = vmul.f32 %v998_v46, %v980_v39 }
 0xbec   :  { %v1039_v16 = vmul.f32 %v1658_v10, %v1038_v9 }
 0xbee   :  { %v1040_v28 = vadd.f32 %v1658_v10, %v1039_v16 }
 0xbf0   :  { %v1044_v7 = vsel %vm1043_vm15, %v1658_v10, %v1040_v28 }
 0xbf1   :  { %v1049_v41 = vsel %vm1046_vm1, %v1048_v8, %v1044_v7 }
 0xc3c   :  { %v983_v0 = vpop.permute.xlu1 %982 }
 0xc3d   :  { %v985_v4 = vmul.f32 %v983_v0, %v980_v39 }
 0xc3f   :  { %987 = vrot.lane.b32.xlu0 %v985_v4, %s1783_s21 }
 0xc44   :  { %v1072_v18 = vpop.permute.xlu1 %1071 }
 0xc45   :  { %v1074_v23 = vmul.f32 %v1072_v18, %v1049_v41 }
 0xc47   :  { %1076 = vrot.lane.b32.xlu0 %v1074_v23, %s1783_s21 }
 0xcb1   :  { %v988_v24 = vpop.permute.xlu0 %987 }
 0xcb2   :  { %v990_v26 = vadd.f32 %v988_v24, %v1955_v47 }
 0xcb4   :  { %1659 = vtanh.f32 %v990_v26 }
 0xcb9   :  { %v1077_v27 = vpop.permute.xlu0 %1076 }
 0xcba   :  { %v1660_v58 = vpop.eup %1659  ;;  %v1079_v29 = vadd.f32 %v1077_v27, %v2111_v11 }
 0xcbb   :  { %994 = vrot.lane.b32.xlu2 %v1660_v58, %s1784_s22 }
 0xcbc   :  { %1661 = vtanh.f32 %v1079_v29 }
 0xcbd   :  { %1663 = vpow2.f32 %v1536_v34 }
 0xcc2   :  { %v1662_v32 = vpop.eup %1661 }
 0xcc3   :  { %1083 = vrot.lane.b32.xlu2 %v1662_v32, %s1784_s22  ;;  %v1664_v22 = vpop.eup %1663 }
 0xcc4   :  { %v1055_v35 = vadd.f32 1.0, %v1664_v22 }
 0xcc6   :  { %1665 = vrcp.f32 %v1055_v35  ;;  %v1067_v42 = vand.u32 2147483648, %v1055_v35  ;;  %vm1061_vm5 = vweird.f32 %v1055_v35  ;;  %v1065_v48 = vand.u32 2147483647, %v1055_v35 }
 0xcc8   :  { %v1068_v1 = vor.u32 1.1754944e-38, %v1067_v42  ;;  %vm1066_vm8 = vcmp.eq.f32.partialorder %v1065_v48, 8.507059e+37 }
 0xccc   :  { %v1666_v37 = vpop.eup %1665 }
 0xccd   :  { %v1057_v63 = vmul.f32 %v1666_v37, %v1055_v35  ;;  %vm1062_vm2 = vweird.f32 %v1666_v37 }
 0xcce   :  { %vm1063_vm6 = vmor %vm1061_vm5, %vm1062_vm2 }
 0xccf   :  { %v1058_v2 = vsub.f32 1.0, %v1057_v63 }
 0xcd1   :  { %v1059_v21 = vmul.f32 %v1666_v37, %v1058_v2 }
 0xcd3   :  { %v1060_v36 = vadd.f32 %v1666_v37, %v1059_v21 }
 0xcd5   :  { %v1064_v20 = vsel %vm1063_vm6, %v1666_v37, %v1060_v36 }
 0xcd6   :  { %v1069_v53 = vsel %vm1066_vm8, %v1068_v1, %v1064_v20 }
 0xcd7   :  { %v1081_v55 = vsub.f32 1.0, %v1069_v53  ;;  %v1089_v61 = vmul.f32 %v1087_v56, %v1069_v53 }
 0xd15   :  { %v995_v49 = vpop.permute.xlu2 %994 }
 0xd16   :  { %v997_v51 = vmul.f32 %v995_v49, %v992_v43 }
 0xd18   :  { %v2154_v52 = vadd.f32 %v1000_v50, %v997_v51 }
 0xd1a   :  { %v1092_v54 = vrot.slane %v2154_v52, 2 }
 0xd1c   :  { %1093 = vrot.lane.b32.xlu1 %v1092_v54, %s1784_s22 }
 0xd1d   :  { %v1084_v60 = vpop.permute.xlu2 %1083 }
 0xd1e   :  { %v1086_v10 = vmul.f32 %v1084_v60, %v1081_v55 }
 0xd20   :  { %v2159_v12 = vadd.f32 %v1089_v61, %v1086_v10 }
 0xd22   :  { %v1161_v15 = vrot.slane %v2159_v12, 4 }
 0xd24   :  { %1539 = vmatmul.msk.f32.vlgmr.msrb.gmra.mxu1 %vm95_vm0, %v1161_v15 }
 0xd8e   :  { %v1094_v17 = vpop.permute.xlu1 %1093 }
 0xd8f   :  { %1537 = vmatmul.msk.f32.vlgmr.msrb.gmra.mxu0 %vm95_vm0, %v1094_v17 }
 0xda1   :  { %v1181_v9 = vpop.f32.mrf.mxu1 }
 0xda2   :  { %v1182_v14 = vadd.f32 %v2132_v40, %v1181_v9 }
 0xda4   :  { %v1185_v6 = vrot.slane %v1182_v14, 6 }
 0xda6   :  { %1229 = vrot.lane.b32.xlu2 %v1185_v6, %s1785_s23  ;;  %1186 = vrot.lane.b32.xlu1 %v1185_v6, %s1784_s22 }
 0xe00   :  { %v1230_v58 = vpop.permute.xlu2 %1229 }
 0xe0c   :  { %v1114_v59 = vpop.f32.mrf.mxu0 }
 0xe0d   :  { %v1115_v16 = vadd.f32 %v2139_v44, %v1114_v59 }
 0xe0f   :  { %v1118_v62 = vrot.slane %v1115_v16, 4 }
 0xe11   :  { %1140 = vrot.lane.b32.xlu0 %v1118_v62, %s1783_s21  ;;  %v1120_v33 = vadd.f32 %v1118_v62, %v1955_v47 }
 0xe13   :  { %v1538_v34 = vmul.f32 -1.442695, %v1120_v33 }
 0xe18   :  { %v1187_v0 = vpop.permute.xlu1 %1186 }
 0xe19   :  { %v1189_v39 = vadd.f32 %v1187_v0, %v1952_v31  ;;  %v1209_v54 = vadd.f32 %v1187_v0, %v2111_v11 }
 0xe1b   :  { %v1540_v4 = vmul.f32 -1.442695, %v1189_v39  ;;  %v1541_v55 = vmul.f32 -1.442695, %v1209_v54 }
 0xe1d   :  { %1667 = vpow2.f32 %v1540_v4 }
 0xe23   :  { %v1668_v28 = vpop.eup %1667 }
 0xe24   :  { %v1193_v5 = vadd.f32 1.0, %v1668_v28 }
 0xe26   :  { %1669 = vrcp.f32 %v1193_v5  ;;  %v1205_v18 = vand.u32 2147483648, %v1193_v5  ;;  %v1203_v23 = vand.u32 2147483647, %v1193_v5  ;;  %vm1199_vm10 = vweird.f32 %v1193_v5 }
 0xe27   :  { %1671 = vpow2.f32 %v1538_v34 }
 0xe28   :  { %v1206_v26 = vor.u32 1.1754944e-38, %v1205_v18  ;;  %vm1204_vm12 = vcmp.eq.f32.partialorder %v1203_v23, 8.507059e+37 }
 0xe2c   :  { %v1670_v25 = vpop.eup %1669 }
 0xe2d   :  { %v1195_v7 = vmul.f32 %v1670_v25, %v1193_v5  ;;  %vm1200_vm9 = vweird.f32 %v1670_v25  ;;  %v1672_v22 = vpop.eup %1671  ;;  %v1245_v5 = vrot.slane %v2159_v12, 2 }
 0xe2e   :  { %vm1201_vm11 = vmor %vm1199_vm10, %vm1200_vm9  ;;  %v1124_v35 = vadd.f32 1.0, %v1672_v22 }
 0xe2f   :  { %v1196_v8 = vsub.f32 1.0, %v1195_v7 }
 0xe30   :  { %1673 = vrcp.f32 %v1124_v35  ;;  %v1136_v42 = vand.u32 2147483648, %v1124_v35  ;;  %vm1130_vm14 = vweird.f32 %v1124_v35  ;;  %v1134_v43 = vand.u32 2147483647, %v1124_v35 }
 0xe31   :  { %v1197_v41 = vmul.f32 %v1670_v25, %v1196_v8 }
 0xe32   :  { %v1137_v48 = vor.u32 1.1754944e-38, %v1136_v42  ;;  %vm1135_vm1 = vcmp.eq.f32.partialorder %v1134_v43, 8.507059e+37 }
 0xe33   :  { %v1198_v24 = vadd.f32 %v1670_v25, %v1197_v41 }
 0xe35   :  { %v1202_v27 = vsel %vm1201_vm11, %v1670_v25, %v1198_v24  ;;  %v1156_v24 = vrot.slane %v2154_v52, 6 }
 0xe36   :  { %v1207_v29 = vsel %vm1204_vm12, %v1206_v26, %v1202_v27  ;;  %v1674_v37 = vpop.eup %1673 }
 0xe37   :  { %v1232_v32 = vmul.f32 %v1230_v58, %v1207_v29  ;;  %v1126_v63 = vmul.f32 %v1674_v37, %v1124_v35  ;;  %vm1131_vm13 = vweird.f32 %v1674_v37 }
 0xe38   :  { %vm1132_vm15 = vmor %vm1130_vm14, %vm1131_vm13 }
 0xe39   :  { %1234 = vrot.lane.b32.xlu1 %v1232_v32, %s1783_s21  ;;  %v1127_v2 = vsub.f32 1.0, %v1126_v63  ;;  %v1411_v32 = vsel %vm1405_vm3, %v2119_v30, %v2154_v52 }
 0xe3b   :  { %v1128_v21 = vmul.f32 %v1674_v37, %v1127_v2 }
 0xe3d   :  { %v1129_v36 = vadd.f32 %v1674_v37, %v1128_v21 }
 0xe3f   :  { %v1133_v46 = vsel %vm1132_vm15, %v1674_v37, %v1129_v36 }
 0xe40   :  { %v1138_v49 = vsel %vm1135_vm1, %v1137_v48, %v1133_v46 }
 0xe41   :  { %v1150_v23 = vsub.f32 1.0, %v1138_v49  ;;  %v1158_v27 = vmul.f32 %v1156_v24, %v1138_v49 }
 0xe83   :  { %v1141_v50 = vpop.permute.xlu0 %1140 }
 0xe84   :  { %v1143_v51 = vmul.f32 %v1141_v50, %v1138_v49 }
 0xe86   :  { %1145 = vrot.lane.b32.xlu0 %v1143_v51, %s1783_s21 }
 0xeab   :  { %v1235_v20 = vpop.permute.xlu1 %1234 }
 0xeac   :  { %v1237_v1 = vadd.f32 %v1235_v20, %v2111_v11 }
 0xeae   :  { %1675 = vtanh.f32 %v1237_v1 }
 0xeaf   :  { %1677 = vpow2.f32 %v1541_v55 }
 0xeb4   :  { %v1676_v53 = vpop.eup %1675 }
 0xeb5   :  { %1241 = vrot.lane.b32.xlu0 %v1676_v53, %s1784_s22  ;;  %v1678_v61 = vpop.eup %1677 }
 0xeb6   :  { %v1213_v15 = vadd.f32 1.0, %v1678_v61 }
 0xeb8   :  { %v1225_v16 = vand.u32 2147483648, %v1213_v15  ;;  %vm1219_vm5 = vweird.f32 %v1213_v15  ;;  %v1223_v62 = vand.u32 2147483647, %v1213_v15 }
 0xeba   :  { %v1226_v39 = vor.u32 1.1754944e-38, %v1225_v16  ;;  %vm1224_vm8 = vcmp.eq.f32.partialorder %v1223_v62, 8.507059e+37 }
 0xef8   :  { %v1146_v56 = vpop.permute.xlu0 %1145 }
 0xef9   :  { %v1148_v60 = vadd.f32 %v1146_v56, %v1955_v47 }
 0xefb   :  { %1679 = vtanh.f32 %v1148_v60 }
 0xefc   :  { %1681 = vrcp.f32 %v1213_v15 }
 0xf01   :  { %v1680_v10 = vpop.eup %1679 }
 0xf02   :  { %1152 = vrot.lane.b32.xlu2 %v1680_v10, %s1784_s22  ;;  %v1682_v17 = vpop.eup %1681 }
 0xf03   :  { %v1215_v9 = vmul.f32 %v1682_v17, %v1213_v15  ;;  %vm1220_vm2 = vweird.f32 %v1682_v17  ;;  %v1423_v15 = vld [vmem:[%s2281_s7 + $0x18] sm:$0xff] }
 0xf04   :  { %vm1221_vm6 = vmor %vm1219_vm5, %vm1220_vm2  ;;  %1479 = vmatpush.msra.mxu1 %v1423_v15 }
 0xf05   :  { %v1216_v14 = vsub.f32 1.0, %v1215_v9 }
 0xf07   :  { %v1217_v6 = vmul.f32 %v1682_v17, %v1216_v14  ;;  %v1420_v14 = vld [vmem:[%s2281_s7] sm:$0xff] }
 0xf09   :  { %v1218_v59 = vadd.f32 %v1682_v17, %v1217_v6 }
 0xf0b   :  { %v1222_v0 = vsel %vm1221_vm6, %v1682_v17, %v1218_v59  ;;  %v1422_v17 = vld [vmem:[%s2281_s7 + $0x10] sm:$0xff] }
 0xf0c   :  { %v1227_v4 = vsel %vm1224_vm8, %v1226_v39, %v1222_v0  ;;  %1480 = vmatpush.msra.mxu1 %v1422_v17 }
 0xf0d   :  { %v1239_v28 = vsub.f32 1.0, %v1227_v4  ;;  %v1247_v7 = vmul.f32 %v1245_v5, %v1227_v4 }
 0xf27   :  { %v1242_v25 = vpop.permute.xlu0 %1241 }
 0xf28   :  { %v1244_v8 = vmul.f32 %v1242_v25, %v1239_v28 }
 0xf2a   :  { %v2179_v18 = vadd.f32 %v1247_v7, %v1244_v8 }
 0xf2c   :  { %v1319_v41 = vrot.slane %v2179_v18, 2 }
 0xf2e   :  { %1544 = vmatmul.msk.f32.vlgmr.msrb.gmra.mxu3 %vm95_vm0, %v1319_v41 }
 0xf5c   :  { %v1153_v26 = vpop.permute.xlu2 %1152 }
 0xf5d   :  { %v1155_v58 = vmul.f32 %v1153_v26, %v1150_v23 }
 0xf5f   :  { %v2186_v29 = vadd.f32 %v1158_v27, %v1155_v58 }
 0xf61   :  { %v1250_v33 = vrot.slane %v2186_v29, 4  ;;  %v2194_v34 = vsel %vm1407_vm4, %v1411_v32, %v2186_v29 }
 0xf63   :  { %1251 = vrot.lane.b32.xlu1 %v1250_v33, %s1784_s22  ;;  %v1427_v33 = vld [vmem:[%s2281_s7 + $0x38] sm:$0xff] }
 0xf64   :  { %1446 = vmatpush.msra.mxu0 %v1427_v33 }
 0xfb1   :  { %v1339_v22 = vpop.f32.mrf.mxu3 }
 0xfb2   :  { %v1340_v35 = vadd.f32 %v2132_v40, %v1339_v22  ;;  %v1426_v22 = vld [vmem:[%s2281_s7 + $0x30] sm:$0xff] }
 0xfb3   :  { %1447 = vmatpush.msra.mxu0 %v1426_v22 }
 0xfb4   :  { %1386 = vrot.lane.b32.xlu1 %v1340_v35, %s1785_s23  ;;  %1343 = vrot.lane.b32.xlu2 %v1340_v35, %s1784_s22  ;;  %v1425_v35 = vld [vmem:[%s2281_s7 + $0x28] sm:$0xff] }
 0xfb5   :  { %1448 = vmatpush.msra.mxu0 %v1425_v35 }
 0xfd5   :  { %v1252_v37 = vpop.permute.xlu1 %1251 }
 0xfd6   :  { %1542 = vmatmul.msk.f32.vlgmr.msrb.gmra.mxu2 %vm95_vm0, %v1252_v37 }
0x100e   :  { %v2201_v63 = vpop.permute.xlu2 %1343 }
0x100f   :  { %v1346_v30 = vadd.f32 %v2201_v63, %v1952_v31  ;;  %v1366_v26 = vadd.f32 %v2201_v63, %v2111_v11 }
0x1011   :  { %v1545_v52 = vmul.f32 -1.442695, %v1346_v30  ;;  %v1546_v27 = vmul.f32 -1.442695, %v1366_v26 }
0x1013   :  { %1683 = vpow2.f32 %v1545_v52 }
0x1019   :  { %v1684_v2 = vpop.eup %1683 }
0x101a   :  { %v1350_v21 = vadd.f32 1.0, %v1684_v2 }
0x101c   :  { %1685 = vrcp.f32 %v1350_v21  ;;  %v1362_v50 = vand.u32 2147483648, %v1350_v21  ;;  %vm1356_vm10 = vweird.f32 %v1350_v21  ;;  %v1360_v51 = vand.u32 2147483647, %v1350_v21 }
0x101e   :  { %v1363_v1 = vor.u32 1.1754944e-38, %v1362_v50  ;;  %vm1361_vm12 = vcmp.eq.f32.partialorder %v1360_v51, 8.507059e+37 }
0x1022   :  { %v1686_v36 = vpop.eup %1685 }
0x1023   :  { %v1352_v42 = vmul.f32 %v1686_v36, %v1350_v21  ;;  %vm1357_vm9 = vweird.f32 %v1686_v36 }
0x1024   :  { %vm1358_vm11 = vmor %vm1356_vm10, %vm1357_vm9 }
0x1025   :  { %v1353_v40 = vsub.f32 1.0, %v1352_v42 }
0x1026   :  { %v1387_v54 = vpop.permute.xlu1 %1386 }
0x1027   :  { %v1354_v43 = vmul.f32 %v1686_v36, %v1353_v40 }
0x1029   :  { %v1355_v48 = vadd.f32 %v1686_v36, %v1354_v43 }
0x102b   :  { %v1359_v31 = vsel %vm1358_vm11, %v1686_v36, %v1355_v48 }
0x102c   :  { %v1364_v53 = vsel %vm1361_vm12, %v1363_v1, %v1359_v31 }
0x102d   :  { %v1389_v55 = vmul.f32 %v1387_v54, %v1364_v53 }
0x1059   :  { %v1272_v46 = vpop.f32.mrf.mxu2 }
0x105a   :  { %v1273_v49 = vadd.f32 %v2139_v44, %v1272_v46 }
0x105c   :  { %v1276_v20 = vrot.slane %v1273_v49, 2 }
0x105e   :  { %1298 = vrot.lane.b32.xlu0 %v1276_v20, %s1783_s21  ;;  %v1278_v44 = vadd.f32 %v1276_v20, %v1955_v47 }
0x1060   :  { %v1543_v56 = vmul.f32 -1.442695, %v1278_v44 }
0x1062   :  { %1687 = vpow2.f32 %v1543_v56 }
0x1066   :  { %1391 = vrot.lane.b32.xlu0 %v1389_v55, %s1783_s21  ;;  %v1417_v55 = vsel %vm1405_vm3, %v2093_v13, %v2050_v57 }
0x1068   :  { %v1688_v60 = vpop.eup %1687 }
0x1069   :  { %v1282_v61 = vadd.f32 1.0, %v1688_v60 }
0x106b   :  { %1689 = vrcp.f32 %v1282_v61  ;;  %v1294_v62 = vand.u32 2147483648, %v1282_v61  ;;  %vm1288_vm14 = vweird.f32 %v1282_v61  ;;  %v1292_v0 = vand.u32 2147483647, %v1282_v61 }
0x106d   :  { %v1295_v4 = vor.u32 1.1754944e-38, %v1294_v62  ;;  %vm1293_vm1 = vcmp.eq.f32.partialorder %v1292_v0, 8.507059e+37 }
0x106e   :  { %1459 = vrot.lane.b32.xlu0 %v2086_v3, %s1784_s22  ;;  %v1421_v3 = vld [vmem:[%s2281_s7 + $0x8] sm:$0xff] }
0x106f   :  { %1481 = vmatpush.msra.mxu1 %v1421_v3 }
0x1071   :  { %v1690_v10 = vpop.eup %1689  ;;  %1482 = vmatpush.msra.mxu1 %v1420_v14 }
0x1072   :  { %v1284_v9 = vmul.f32 %v1690_v10, %v1282_v61  ;;  %vm1289_vm13 = vweird.f32 %v1690_v10 }
0x1073   :  { %vm1290_vm15 = vmor %vm1288_vm14, %vm1289_vm13 }
0x1074   :  { %v1285_v6 = vsub.f32 1.0, %v1284_v9 }
0x1076   :  { %v1286_v59 = vmul.f32 %v1690_v10, %v1285_v6 }
0x1078   :  { %v1287_v16 = vadd.f32 %v1690_v10, %v1286_v59 }
0x107a   :  { %v1291_v39 = vsel %vm1290_vm15, %v1690_v10, %v1287_v16 }
0x107b   :  { %v1296_v28 = vsel %vm1293_vm1, %v1295_v4, %v1291_v39 }
0x10d0   :  { %v1299_v5 = vpop.permute.xlu0 %1298 }
0x10d1   :  { %v1301_v25 = vmul.f32 %v1299_v5, %v1296_v28 }
0x10d3   :  { %1303 = vrot.lane.b32.xlu2 %v1301_v25, %s1783_s21 }
0x10d8   :  { %v1392_v7 = vpop.permute.xlu0 %1391 }
0x10d9   :  { %v1394_v8 = vadd.f32 %v1392_v7, %v2111_v11  ;;  %v1424_v11 = vld [vmem:[%s2281_s7 + $0x20] sm:$0xff] }
0x10da   :  { %1449 = vmatpush.msra.mxu0 %v1424_v11 }
0x10db   :  { %1691 = vtanh.f32 %v1394_v8 }
0x10dc   :  { %1693 = vpow2.f32 %v1546_v27 }
0x10e0   :  { %v1460_v23 = vpop.permute.xlu0 %1459 }
0x10e1   :  { %v1692_v24 = vpop.eup %1691  ;;  %1549 = vmatmul.msk.f32.vlgmr.msra.gmra.mxu1 %vm95_vm0, %v1460_v23 }
0x10e2   :  { %1398 = vrot.lane.b32.xlu2 %v1692_v24, %s1784_s22  ;;  %v1694_v58 = vpop.eup %1693 }
0x10e3   :  { %v1370_v32 = vadd.f32 1.0, %v1694_v58 }
0x10e5   :  { %1695 = vrcp.f32 %v1370_v32  ;;  %v1382_v42 = vand.u32 2147483648, %v1370_v32  ;;  %vm1376_vm5 = vweird.f32 %v1370_v32  ;;  %v1380_v40 = vand.u32 2147483647, %v1370_v32 }
0x10e7   :  { %v1383_v48 = vor.u32 1.1754944e-38, %v1382_v42  ;;  %vm1381_vm8 = vcmp.eq.f32.partialorder %v1380_v40, 8.507059e+37 }
0x10eb   :  { %v1696_v37 = vpop.eup %1695 }
0x10ec   :  { %v1372_v63 = vmul.f32 %v1696_v37, %v1370_v32  ;;  %vm1377_vm2 = vweird.f32 %v1696_v37 }
0x10ed   :  { %vm1378_vm6 = vmor %vm1376_vm5, %vm1377_vm2 }
0x10ee   :  { %v1373_v30 = vsub.f32 1.0, %v1372_v63 }
0x10f0   :  { %v1374_v2 = vmul.f32 %v1696_v37, %v1373_v30 }
0x10f2   :  { %v1375_v36 = vadd.f32 %v1696_v37, %v1374_v2 }
0x10f4   :  { %v1379_v43 = vsel %vm1378_vm6, %v1696_v37, %v1375_v36 }
0x10f5   :  { %v1384_v49 = vsel %vm1381_vm8, %v1383_v48, %v1379_v43 }
0x10f6   :  { %v1396_v50 = vsub.f32 1.0, %v1384_v49  ;;  %v1403_v20 = vmul.f32 %v1384_v49, %v1319_v41  ;;  %v1418_v41 = vsel %vm1407_vm4, %v1417_v55, %v2008_v19  ;;  %v1570_v19 = vld [vmem:[%s2282_s8] ss:$0 sm:$0xff] }
0x10f7   :  { %v1419_v44 = vsel %vm1409_vm7, %v1418_v41, %v1975_v45 }
0x112d   :  { %v1304_v52 = vpop.permute.xlu2 %1303 }
0x112e   :  { %v1306_v21 = vadd.f32 %v1304_v52, %v1955_v47 }
0x1130   :  { %1697 = vtanh.f32 %v1306_v21 }
0x1136   :  { %v1698_v46 = vpop.eup %1697 }
0x1137   :  { %1310 = vrot.lane.b32.xlu1 %v1698_v46, %s1784_s22 }
0x113c   :  { %v1399_v51 = vpop.permute.xlu2 %1398 }
0x113d   :  { %v1401_v47 = vmul.f32 %v1399_v51, %v1396_v50 }
0x113f   :  { %v1404_v31 = vadd.f32 %v1403_v20, %v1401_v47 }
0x1141   :  { %v1414_v1 = vsel %vm1405_vm3, %v1404_v31, %v2179_v18  ;;  %v1308_v18 = vsub.f32 1.0, %v1296_v28  ;;  %vm1496_vm3 = vcmask 31744  }
0x1142   :  { %v1415_v53 = vsel %vm1407_vm4, %v1414_v1, %v2159_v12  ;;  %v1314_v12 = vrot.slane %v2186_v29, 6 }
0x1143   :  { %v1416_v54 = vsel %vm1409_vm7, %v1415_v53, %v2124_v38 }
0x1144   :  { %1547 = vmatmul.msk.f32.vlgmr.msra.gmra.mxu0 %vm95_vm0, %v1416_v54  ;;  %v1316_v60 = vmul.f32 %v1314_v12, %v1296_v28 }
0x114c   :  { %1548 = vmatmul.msk.f32.gmra.mxu0 %vm95_vm0, %v1419_v44 }
0x115e   :  { %v1484_v57 = vpop.f32.mrf.mxu1 }
0x11a9   :  { %v1311_v56 = vpop.permute.xlu1 %1310 }
0x11aa   :  { %v1313_v38 = vmul.f32 %v1311_v56, %v1308_v18 }
0x11ac   :  { %v1317_v61 = vadd.f32 %v1316_v60, %v1313_v38 }
0x11ae   :  { %v1413_v10 = vsel %vm1409_vm7, %v2194_v34, %v1317_v61 }
0x11af   :  { %1461 = vrot.lane.b32.xlu1 %v1413_v10, %s1784_s22 }
0x11c1   :  { %v1451_v45 = vpop.f32.mrf.mxu0 }
0x11c2   :  { %v1485_v13 = vadd.f32 %v1484_v57, %v1451_v45 }
0x11c4   :  { %v1494_v15 = vadd.f32 %v1570_v19, %v1485_v13 }
0x11c6   :  { %1497 = vst.msk [vmem:[%s2283_s9] sm:$0xff] %vm1496_vm3, %v1494_v15 }
0x11c9   :  { %v1454_v17 = vpop.f32.mrf.mxu0 }
0x1221   :  { %v1462_v29 = vpop.permute.xlu1 %1461 }
0x1222   :  { %1550 = vmatmul.msk.f32.gmra.mxu1 %vm95_vm0, %v1462_v29 }
0x129f   :  { %v1487_v34 = vpop.f32.mrf.mxu1 }
0x12a0   :  { %v1488_v9 = vadd.f32 %v1487_v34, %v1454_v17 }
0x12a2   :  { %v1495_v3 = vadd.f32 %v1570_v19, %v1488_v9 }
0x12a4   :  { %1498 = vst.msk [vmem:[%s2283_s9 + $0x8] sm:$0xff] %vm1496_vm3, %v1495_v3 }
0x12a5   :  { %1503 = vsyncpa [#allocation3], 1 }
0x12a6   :  { %1504 = vsyncpa [#allocation5], 1 }

</bundles_post_ra>
